<compile_context>
chip_gen: v7x
topology: tpu7x:2x2x1
jax: 0.10.0
libtpu: 0.0.40
codegen_flags: <defaults>
</compile_context>

<pallas_src>
import functools

import numpy as np

import jax
import jax.numpy as jnp
from jax import lax
from jax.experimental import pallas as pl
from jax.experimental.pallas import tpu as pltpu

BN_EPS = 1e-5

_PAD_LO = 3                # left halo needed by the largest kernel (K=8)
_PAD_HI = 4                # right halo needed by the largest kernel (K=8)
_HALO = _PAD_LO + _PAD_HI  # 7


# --------------------------------------------------------------------------
# Fused Pallas kernel: full ResNetRepresentation forward for TB batch elements
# --------------------------------------------------------------------------
def _fused_resnet_kernel(plan, tb, lp, c_in0, mxu_dtype,
                         x_ref, w_ref, mask_ref, mean_ref, o_ref,
                         buf_a, buf_b, buf_c):
    """plan: tuple of (c_in, c_out, has_residual) per ResNetBlock.

    Activation layout (per VMEM scratch buffer, shape (c_max, wt)):
      element e's data lives at columns [_PAD_LO + e*lp + _PAD_LO,
                                         _PAD_LO + e*lp + _PAD_LO + L)
      with >= 3 zero columns to its left and >= 4 to its right, so every conv's
      TF-"same" padding reads true zeros.  Conv outputs are computed for the
      whole [_PAD_LO, _PAD_LO + wo) window in one matmul; non-data ("halo")
      output columns are garbage and are forced to 0 with `jnp.where(mask, ...)`
      before write-back (multiplying would propagate NaNs from stale VMEM).
    """
    wo = tb * lp
    mask_f = mask_ref[...]                 # (1, wo) f32: 1.0 at data columns
    mask_b = mask_f > 0.5
    bias_row = mask_f.astype(mxu_dtype)    # bias row of the augmented im2col matrix

    # Stage the TB pre-padded input slabs ([3 zeros | L data | 4 zeros] each).
    for e in range(tb):
        buf_a[0:c_in0, _PAD_LO + e * lp:_PAD_LO + (e + 1) * lp] = x_ref[:, e, :]

    def conv(src, c_in, c_out, k, idx, relu):
        # One im2col MXU matmul covering all TB elements; the folded BN/bias
        # shift is the last weight column, matched by the bias_row in `col`.
        lo = (k - 1) // 2
        xw = src[0:c_in, :]                                    # (c_in, wt)
        cols = [xw[:, _PAD_LO - lo + t:_PAD_LO - lo + t + wo] for t in range(k)]
        col = jnp.concatenate(cols, axis=0).astype(mxu_dtype)  # (c_in*k, wo)
        col = jnp.concatenate([col, bias_row], axis=0)         # (c_in*k + 1, wo)
        w = w_ref[idx, 0:c_out, 0:c_in * k + 1].astype(mxu_dtype)
        y = jnp.dot(w, col, preferred_element_type=jnp.float32)
        if relu:
            y = jnp.maximum(y, 0.0)
        return y                                               # (c_out, wo) f32

    idx = 0
    h = None
    n_blocks = len(plan)
    for bi, (c_in_b, c_out_b, has_res) in enumerate(plan):
        # ConvBlock 1 (K=8) reads the block input from buf_a.
        h = conv(buf_a, c_in_b, c_out_b, 8, idx, True)
        idx += 1
        buf_b[0:c_out_b, _PAD_LO:_PAD_LO + wo] = jnp.where(mask_b, h, 0.0)
        # ConvBlock 2 (K=5).
        h = conv(buf_b, c_out_b, c_out_b, 5, idx, True)
        idx += 1
        buf_c[0:c_out_b, _PAD_LO:_PAD_LO + wo] = jnp.where(mask_b, h, 0.0)
        # ConvBlock 3 (K=3) -- ReLU BEFORE the residual add (as in the module).
        h = conv(buf_c, c_out_b, c_out_b, 3, idx, True)
        idx += 1
        if has_res:
            r = conv(buf_a, c_in_b, c_out_b, 1, idx, False)
            idx += 1
            h = h + r
        # Blocks with c_in == c_out have no shortcut at all (matches module).
        h = jnp.where(mask_b, h, 0.0)
        if bi + 1 < n_blocks:
            buf_a[0:c_out_b, _PAD_LO:_PAD_LO + wo] = h   # next block's input

    # Fused temporal mean on the (otherwise idle) MXU:
    #   (c_last, wo) @ (wo, tb) averaging matrix -> (c_last, tb).
    o_ref[0] = jnp.dot(h, mean_ref[...],
                       preferred_element_type=jnp.float32).astype(o_ref.dtype)


# --------------------------------------------------------------------------
# One-time parameter preparation: fold BN, append bias column, pack all convs
# --------------------------------------------------------------------------
def fold_conv_bn(p):
    """(w, b, gamma, beta, mean, var) -> (c_out, k*c_in + 1) augmented weight.

    cols [0, k*c_in): w[co, ci, t] * gamma[co] / sqrt(var[co] + eps) at t*c_in+ci
    col  k*c_in     : (b[co] - mean[co]) * scale[co] + beta[co]   (BN/bias shift)
    """
    w, b, gamma, beta, mean, var = p
    c_out, c_in, k = w.shape
    scale = gamma / jnp.sqrt(var + BN_EPS)
    w2d = (w * scale[:, None, None]).transpose(0, 2, 1).reshape(c_out, k * c_in)
    shift = ((b - mean) * scale + beta).reshape(c_out, 1)
    return jnp.concatenate([w2d, shift], axis=1).astype(jnp.float32)


def prepare_fused_params(params):
    """-> (plan, w_packed) where w_packed is ONE zero-padded (n_conv, 8, 65)."""
    plan = []
    folded = []
    for p in params:
        c_out, c_in, k1 = p["conv1"][0].shape
        assert k1 == 8 and p["conv2"][0].shape[2] == 5 and p["conv3"][0].shape[2] == 3
        has_res = "residual" in p
        plan.append((int(c_in), int(c_out), has_res))
        for name in ("conv1", "conv2", "conv3"):
            folded.append(fold_conv_bn(p[name]))
        if has_res:
            assert p["residual"][0].shape[2] == 1
            folded.append(fold_conv_bn(p["residual"]))
    r_max = max(f.shape[0] for f in folded)
    ck_max = max(f.shape[1] for f in folded)
    w_packed = jnp.zeros((len(folded), r_max, ck_max), jnp.float32)
    for i, f in enumerate(folded):
        w_packed = w_packed.at[i, :f.shape[0], :f.shape[1]].set(f)
    return tuple(plan), w_packed


# --------------------------------------------------------------------------
# Wrapper around pallas_call
# --------------------------------------------------------------------------
def fused_resnet_forward(x, plan, w_packed, *, batch_tile=8,
                         mxu_dtype=jnp.float32):
    """x: (B, C_in, L) float32 -> (B, C_last) representation."""
    B, c_in0, L = x.shape
    c_last = plan[-1][1]
    c_max = max([8, c_in0] + [c for (_, c, _) in plan])
    tb = int(batch_tile)
    lp = L + _HALO                      # per-element slab: [3 zeros | L | 4 zeros]
    wo = tb * lp                        # matmul lane width per grid step
    wt = wo + _HALO                     # scratch width (edge margin never read for data)
    b_pad = ((B + tb - 1) // tb) * tb
    nb = b_pad // tb

    # HBM-side layout plumbing (cheap, done by XLA): per-element "same"-padding
    # slabs + batch moved next to length so each step gets a lane-dense block.
    xp = jnp.pad(x, ((0, b_pad - B), (0, 0), (_PAD_LO, _PAD_HI)))
    xt = jnp.transpose(xp, (1, 0, 2))                    # (C_in, B_pad, lp)

    # Data-column mask (also the bias row) and per-element averaging matrix.
    mask_np = np.zeros((1, wo), np.float32)
    mean_np = np.zeros((wo, tb), np.float32)
    for e in range(tb):
        s = _PAD_LO + e * lp
        mask_np[0, s:s + L] = 1.0
        mean_np[s:s + L, e] = 1.0 / L
    mask = jnp.asarray(mask_np)
    meanmat = jnp.asarray(mean_np)

    kernel = functools.partial(_fused_resnet_kernel, plan, tb, lp, c_in0, mxu_dtype)

    out = pl.pallas_call(
        kernel,
        out_shape=jax.ShapeDtypeStruct((nb, c_last, tb), jnp.float32),
        grid=(nb,),
        in_specs=[
            pl.BlockSpec((c_in0, tb, lp), lambda b: (0, b, 0)),
            pl.BlockSpec(w_packed.shape, lambda b: (0, 0, 0)),
            pl.BlockSpec((1, wo), lambda b: (0, 0)),
            pl.BlockSpec((wo, tb), lambda b: (0, 0)),
        ],
        out_specs=pl.BlockSpec((1, c_last, tb), lambda b: (b, 0, 0)),
        scratch_shapes=[pltpu.VMEM((c_max, wt), jnp.float32) for _ in range(3)],
        compiler_params=pltpu.CompilerParams(
            dimension_semantics=("parallel",),     # >=2 steps -> both v7x TCs
            vmem_limit_bytes=32 * 1024 * 1024,     # safe on v5e/v6e/v7x
        ),
    )(xt, w_packed.astype(mxu_dtype), mask, meanmat)

    z = jnp.transpose(out, (0, 2, 1)).reshape(b_pad, c_last)
    return z[:B]


def resnet_representation_forward(x, params, **kw):
    plan, w_packed = prepare_fused_params(params)
    return fused_resnet_forward(x, plan, w_packed, **kw)


# --------------------------------------------------------------------------
# Parameter construction (deterministic, PyTorch-default-style init)
# --------------------------------------------------------------------------
def init_conv_bn(key, c_in, c_out, k):
    kw, kb = jax.random.split(key)
    bound = 1.0 / jnp.sqrt(jnp.float32(c_in * k))
    w = jax.random.uniform(kw, (c_out, c_in, k), jnp.float32, -bound, bound)
    b = jax.random.uniform(kb, (c_out,), jnp.float32, -bound, bound)
    # BatchNorm1d defaults: gamma=1, beta=0, running_mean=0, running_var=1
    gamma = jnp.ones((c_out,), jnp.float32)
    beta = jnp.zeros((c_out,), jnp.float32)
    mean = jnp.zeros((c_out,), jnp.float32)
    var = jnp.ones((c_out,), jnp.float32)
    return (w, b, gamma, beta, mean, var)


def init_resnet_block(key, c_in, c_out):
    keys = jax.random.split(key, 4)
    p = {
        "conv1": init_conv_bn(keys[0], c_in, c_out, 8),
        "conv2": init_conv_bn(keys[1], c_out, c_out, 5),
        "conv3": init_conv_bn(keys[2], c_out, c_out, 3),
    }
    if c_in != c_out:
        p["residual"] = init_conv_bn(keys[3], c_in, c_out, 1)
    return p


def init_model(key, in_channels, mid_channels=4):
    keys = jax.random.split(key, 3)
    return [
        init_resnet_block(keys[0], in_channels, mid_channels),
        init_resnet_block(keys[1], mid_channels, mid_channels * 2),
        init_resnet_block(keys[2], mid_channels * 2, mid_channels * 2),
    ]


# --------------------------------------------------------------------------
# Pure-JAX reference (for correctness check)
# --------------------------------------------------------------------------
def _ref_conv_bn_act(x, w, b, gamma, beta, mean, var, *, relu, residual=None):
    K = w.shape[2]
    lo = (K - 1) // 2
    hi = (K - 1) - lo
    y = lax.conv_general_dilated(
        x, w, window_strides=(1,), padding=[(lo, hi)],
        dimension_numbers=("NCH", "OIH", "NCH"))
    y = y + b[None, :, None]
    y = ((y - mean[None, :, None]) / jnp.sqrt(var[None, :, None] + BN_EPS)
         * gamma[None, :, None] + beta[None, :, None])
    if relu:
        y = jnp.maximum(y, 0.0)
    if residual is not None:
        y = y + residual
    return y


def _ref_forward(x, params):
    z = x
    for p in params:
        h = _ref_conv_bn_act(z, *p["conv1"], relu=True)
        h = _ref_conv_bn_act(h, *p["conv2"], relu=True)
        if "residual" in p:
            res = _ref_conv_bn_act(z, *p["residual"], relu=False)
            h = _ref_conv_bn_act(h, *p["conv3"], relu=True, residual=res)
        else:
            h = _ref_conv_bn_act(h, *p["conv3"], relu=True)
        z = h
    return jnp.mean(z, axis=-1)


# --------------------------------------------------------------------------
if __name__ == "__main__":
    key = jax.random.PRNGKey(0)
    k_x, k_p = jax.random.split(key)

    B, C_in, L = 16, 3, 32        # NCL input; mid_channels=4 -> output (16, 8)
    x = jax.random.normal(k_x, (B, C_in, L), dtype=jnp.float32)
    params = init_model(k_p, in_channels=C_in, mid_channels=4)

    plan, w_packed = prepare_fused_params(params)
    z_ref = _ref_forward(x, params)

    # f32 MXU path (exact vs the reference).
    z32 = fused_resnet_forward(x, plan, w_packed,
                               batch_tile=8, mxu_dtype=jnp.float32)
    z32 = jax.block_until_ready(z32)
    assert z32.shape == (B, 8), z32.shape
    err32 = float(jnp.max(jnp.abs(z32 - z_ref)))
    assert jnp.allclose(z32, z_ref, rtol=5e-4, atol=5e-4), f"f32 max abs err {err32}"

    # bf16 MXU-operand path (v6e/v7x optimization; f32 accumulate + f32 VPU work).
    zbf = fused_resnet_forward(x, plan, w_packed,
                               batch_tile=8, mxu_dtype=jnp.bfloat16)
    zbf = jax.block_until_ready(zbf)
    errbf = float(jnp.max(jnp.abs(zbf - z_ref)))
    assert jnp.allclose(zbf, z_ref, rtol=1e-1, atol=1e-1), f"bf16 max abs err {errbf}"

    print("KERNEL_OK")
</pallas_src>

<mosaic_0001>
module attributes {stable_mosaic.version = 11 : i64} {
  func.func @_fused_resnet_kernel(%arg0: i32, %arg1: memref<3x8x39xf32, #tpu.memory_space<vmem>>, %arg2: memref<11x8x65xf32, #tpu.memory_space<vmem>>, %arg3: memref<1x312xf32, #tpu.memory_space<vmem>>, %arg4: memref<312x8xf32, #tpu.memory_space<vmem>>, %arg5: memref<1x8x8xf32, #tpu.memory_space<vmem>>, %arg6: memref<8x319xf32, #tpu.memory_space<vmem>>, %arg7: memref<8x319xf32, #tpu.memory_space<vmem>>, %arg8: memref<8x319xf32, #tpu.memory_space<vmem>>) attributes {dimension_semantics = [#tpu.dimension_semantics<parallel>], iteration_bounds = array<i64: 2>, scalar_prefetch = 0 : i64, scratch_operands = 3 : i64, tpu.core_type = #tpu.core_type<tc>, window_params = [{transform_indices = @transform_0, window_bounds = array<i64: 3, 8, 39>}, {pipeline_mode = #tpu.pipeline_mode<synchronous>, transform_indices = @transform_1, window_bounds = array<i64: 11, 8, 65>}, {pipeline_mode = #tpu.pipeline_mode<synchronous>, transform_indices = @transform_2, window_bounds = array<i64: 1, 312>}, {pipeline_mode = #tpu.pipeline_mode<synchronous>, transform_indices = @transform_3, window_bounds = array<i64: 312, 8>}, {transform_indices = @transform_4, window_bounds = array<i64: 1, 8, 8>}]} {
    %c0 = arith.constant 0 : index
    %c0_0 = arith.constant 0 : index
    %0 = vector.load %arg3[%c0, %c0_0] : memref<1x312xf32, #tpu.memory_space<vmem>>, vector<1x312xf32>
    %cst = arith.constant 5.000000e-01 : f32
    %1 = vector.broadcast %cst : f32 to vector<1x312xf32>
    %2 = arith.cmpf ogt, %0, %1 : vector<1x312xf32>
    %c0_1 = arith.constant 0 : index
    %c0_2 = arith.constant 0 : index
    %c0_3 = arith.constant 0 : index
    %3 = vector.load %arg1[%c0_1, %c0_2, %c0_3] : memref<3x8x39xf32, #tpu.memory_space<vmem>>, vector<3x1x39xf32>
    %4 = vector.shape_cast %3 : vector<3x1x39xf32> to vector<3x39xf32>
    %c0_4 = arith.constant 0 : index
    %c3 = arith.constant 3 : index
    %5 = vector.load %arg6[%c0_4, %c3] : memref<8x319xf32, #tpu.memory_space<vmem>>, vector<3x39xf32>
    tpu.vector_store %arg6[%c0_4, %c3], %4 {strides = array<i32>} : memref<8x319xf32, #tpu.memory_space<vmem>>, vector<3x39xf32>,
    %c0_5 = arith.constant 0 : index
    %c1 = arith.constant 1 : index
    %c0_6 = arith.constant 0 : index
    %6 = vector.load %arg1[%c0_5, %c1, %c0_6] : memref<3x8x39xf32, #tpu.memory_space<vmem>>, vector<3x1x39xf32>
    %7 = vector.shape_cast %6 : vector<3x1x39xf32> to vector<3x39xf32>
    %c0_7 = arith.constant 0 : index
    %c42 = arith.constant 42 : index
    %8 = vector.load %arg6[%c0_7, %c42] : memref<8x319xf32, #tpu.memory_space<vmem>>, vector<3x39xf32>
    tpu.vector_store %arg6[%c0_7, %c42], %7 {strides = array<i32>} : memref<8x319xf32, #tpu.memory_space<vmem>>, vector<3x39xf32>,
    %c0_8 = arith.constant 0 : index
    %c2 = arith.constant 2 : index
    %c0_9 = arith.constant 0 : index
    %9 = vector.load %arg1[%c0_8, %c2, %c0_9] : memref<3x8x39xf32, #tpu.memory_space<vmem>>, vector<3x1x39xf32>
    %10 = vector.shape_cast %9 : vector<3x1x39xf32> to vector<3x39xf32>
    %c0_10 = arith.constant 0 : index
    %c81 = arith.constant 81 : index
    %11 = vector.load %arg6[%c0_10, %c81] : memref<8x319xf32, #tpu.memory_space<vmem>>, vector<3x39xf32>
    tpu.vector_store %arg6[%c0_10, %c81], %10 {strides = array<i32>} : memref<8x319xf32, #tpu.memory_space<vmem>>, vector<3x39xf32>,
    %c0_11 = arith.constant 0 : index
    %c3_12 = arith.constant 3 : index
    %c0_13 = arith.constant 0 : index
    %12 = vector.load %arg1[%c0_11, %c3_12, %c0_13] : memref<3x8x39xf32, #tpu.memory_space<vmem>>, vector<3x1x39xf32>
    %13 = vector.shape_cast %12 : vector<3x1x39xf32> to vector<3x39xf32>
    %c0_14 = arith.constant 0 : index
    %c120 = arith.constant 120 : index
    %14 = vector.load %arg6[%c0_14, %c120] : memref<8x319xf32, #tpu.memory_space<vmem>>, vector<3x39xf32>
    tpu.vector_store %arg6[%c0_14, %c120], %13 {strides = array<i32>} : memref<8x319xf32, #tpu.memory_space<vmem>>, vector<3x39xf32>,
    %c0_15 = arith.constant 0 : index
    %c4 = arith.constant 4 : index
    %c0_16 = arith.constant 0 : index
    %15 = vector.load %arg1[%c0_15, %c4, %c0_16] : memref<3x8x39xf32, #tpu.memory_space<vmem>>, vector<3x1x39xf32>
    %16 = vector.shape_cast %15 : vector<3x1x39xf32> to vector<3x39xf32>
    %c0_17 = arith.constant 0 : index
    %c159 = arith.constant 159 : index
    %17 = vector.load %arg6[%c0_17, %c159] : memref<8x319xf32, #tpu.memory_space<vmem>>, vector<3x39xf32>
    tpu.vector_store %arg6[%c0_17, %c159], %16 {strides = array<i32>} : memref<8x319xf32, #tpu.memory_space<vmem>>, vector<3x39xf32>,
    %c0_18 = arith.constant 0 : index
    %c5 = arith.constant 5 : index
    %c0_19 = arith.constant 0 : index
    %18 = vector.load %arg1[%c0_18, %c5, %c0_19] : memref<3x8x39xf32, #tpu.memory_space<vmem>>, vector<3x1x39xf32>
    %19 = vector.shape_cast %18 : vector<3x1x39xf32> to vector<3x39xf32>
    %c0_20 = arith.constant 0 : index
    %c198 = arith.constant 198 : index
    %20 = vector.load %arg6[%c0_20, %c198] : memref<8x319xf32, #tpu.memory_space<vmem>>, vector<3x39xf32>
    tpu.vector_store %arg6[%c0_20, %c198], %19 {strides = array<i32>} : memref<8x319xf32, #tpu.memory_space<vmem>>, vector<3x39xf32>,
    %c0_21 = arith.constant 0 : index
    %c6 = arith.constant 6 : index
    %c0_22 = arith.constant 0 : index
    %21 = vector.load %arg1[%c0_21, %c6, %c0_22] : memref<3x8x39xf32, #tpu.memory_space<vmem>>, vector<3x1x39xf32>
    %22 = vector.shape_cast %21 : vector<3x1x39xf32> to vector<3x39xf32>
    %c0_23 = arith.constant 0 : index
    %c237 = arith.constant 237 : index
    %23 = vector.load %arg6[%c0_23, %c237] : memref<8x319xf32, #tpu.memory_space<vmem>>, vector<3x39xf32>
    tpu.vector_store %arg6[%c0_23, %c237], %22 {strides = array<i32>} : memref<8x319xf32, #tpu.memory_space<vmem>>, vector<3x39xf32>,
    %c0_24 = arith.constant 0 : index
    %c7 = arith.constant 7 : index
    %c0_25 = arith.constant 0 : index
    %24 = vector.load %arg1[%c0_24, %c7, %c0_25] : memref<3x8x39xf32, #tpu.memory_space<vmem>>, vector<3x1x39xf32>
    %25 = vector.shape_cast %24 : vector<3x1x39xf32> to vector<3x39xf32>
    %c0_26 = arith.constant 0 : index
    %c276 = arith.constant 276 : index
    %26 = vector.load %arg6[%c0_26, %c276] : memref<8x319xf32, #tpu.memory_space<vmem>>, vector<3x39xf32>
    tpu.vector_store %arg6[%c0_26, %c276], %25 {strides = array<i32>} : memref<8x319xf32, #tpu.memory_space<vmem>>, vector<3x39xf32>,
    %c0_27 = arith.constant 0 : index
    %c0_28 = arith.constant 0 : index
    %27 = vector.load %arg6[%c0_27, %c0_28] : memref<8x319xf32, #tpu.memory_space<vmem>>, vector<3x319xf32>
    %28 = vector.extract_strided_slice %27 {offsets = [0, 0], sizes = [3, 312], strides = [1, 1]} : vector<3x319xf32> to vector<3x312xf32>
    %29 = vector.extract_strided_slice %27 {offsets = [0, 1], sizes = [3, 312], strides = [1, 1]} : vector<3x319xf32> to vector<3x312xf32>
    %30 = vector.extract_strided_slice %27 {offsets = [0, 2], sizes = [3, 312], strides = [1, 1]} : vector<3x319xf32> to vector<3x312xf32>
    %31 = vector.extract_strided_slice %27 {offsets = [0, 3], sizes = [3, 312], strides = [1, 1]} : vector<3x319xf32> to vector<3x312xf32>
    %32 = vector.extract_strided_slice %27 {offsets = [0, 4], sizes = [3, 312], strides = [1, 1]} : vector<3x319xf32> to vector<3x312xf32>
    %33 = vector.extract_strided_slice %27 {offsets = [0, 5], sizes = [3, 312], strides = [1, 1]} : vector<3x319xf32> to vector<3x312xf32>
    %34 = vector.extract_strided_slice %27 {offsets = [0, 6], sizes = [3, 312], strides = [1, 1]} : vector<3x319xf32> to vector<3x312xf32>
    %35 = vector.extract_strided_slice %27 {offsets = [0, 7], sizes = [3, 312], strides = [1, 1]} : vector<3x319xf32> to vector<3x312xf32>
    %36 = tpu.concatenate %28, %29, %30, %31, %32, %33, %34, %35 in 0 : vector<3x312xf32>, vector<3x312xf32>, vector<3x312xf32>, vector<3x312xf32>, vector<3x312xf32>, vector<3x312xf32>, vector<3x312xf32>, vector<3x312xf32> -> vector<24x312xf32>
    %37 = tpu.concatenate %36, %0 in 0 : vector<24x312xf32>, vector<1x312xf32> -> vector<25x312xf32>
    %c0_29 = arith.constant 0 : index
    %c0_30 = arith.constant 0 : index
    %c0_31 = arith.constant 0 : index
    %38 = vector.load %arg2[%c0_29, %c0_30, %c0_31] : memref<11x8x65xf32, #tpu.memory_space<vmem>>, vector<1x4x25xf32>
    %39 = vector.shape_cast %38 : vector<1x4x25xf32> to vector<4x25xf32>
    %cst_32 = arith.constant dense<0.000000e+00> : vector<4x312xf32>
    %40 = tpu.matmul %39, %37, %cst_32 {dimension_numbers = #tpu.dot_dimension_numbers<[1], [0], [0], [1], [0, 0, 1, 1], [], []>} : vector<4x25xf32>, vector<25x312xf32>, vector<4x312xf32> -> vector<4x312xf32>
    %cst_33 = arith.constant 0.000000e+00 : f32
    %41 = vector.broadcast %cst_33 : f32 to vector<4x312xf32>
    %42 = arith.maximumf %40, %41 : vector<4x312xf32>
    %cst_34 = arith.constant 0.000000e+00 : f32
    %43 = vector.shape_cast %2 : vector<1x312xi1> to vector<1x312xi1>
    %44 = vector.broadcast %43 : vector<1x312xi1> to vector<4x312xi1>
    %45 = vector.broadcast %cst_34 : f32 to vector<4x312xf32>
    %46 = arith.select %44, %42, %45 : vector<4x312xi1>, vector<4x312xf32>
    %c0_35 = arith.constant 0 : index
    %c3_36 = arith.constant 3 : index
    %47 = vector.load %arg7[%c0_35, %c3_36] : memref<8x319xf32, #tpu.memory_space<vmem>>, vector<4x312xf32>
    tpu.vector_store %arg7[%c0_35, %c3_36], %46 {strides = array<i32>} : memref<8x319xf32, #tpu.memory_space<vmem>>, vector<4x312xf32>,
    %c0_37 = arith.constant 0 : index
    %c0_38 = arith.constant 0 : index
    %48 = vector.load %arg7[%c0_37, %c0_38] : memref<8x319xf32, #tpu.memory_space<vmem>>, vector<4x319xf32>
    %49 = vector.extract_strided_slice %48 {offsets = [0, 1], sizes = [4, 312], strides = [1, 1]} : vector<4x319xf32> to vector<4x312xf32>
    %50 = vector.extract_strided_slice %48 {offsets = [0, 2], sizes = [4, 312], strides = [1, 1]} : vector<4x319xf32> to vector<4x312xf32>
    %51 = vector.extract_strided_slice %48 {offsets = [0, 3], sizes = [4, 312], strides = [1, 1]} : vector<4x319xf32> to vector<4x312xf32>
    %52 = vector.extract_strided_slice %48 {offsets = [0, 4], sizes = [4, 312], strides = [1, 1]} : vector<4x319xf32> to vector<4x312xf32>
    %53 = vector.extract_strided_slice %48 {offsets = [0, 5], sizes = [4, 312], strides = [1, 1]} : vector<4x319xf32> to vector<4x312xf32>
    %54 = tpu.concatenate %49, %50, %51, %52, %53 in 0 : vector<4x312xf32>, vector<4x312xf32>, vector<4x312xf32>, vector<4x312xf32>, vector<4x312xf32> -> vector<20x312xf32>
    %55 = tpu.concatenate %54, %0 in 0 : vector<20x312xf32>, vector<1x312xf32> -> vector<21x312xf32>
    %c1_39 = arith.constant 1 : index
    %c0_40 = arith.constant 0 : index
    %c0_41 = arith.constant 0 : index
    %56 = vector.load %arg2[%c1_39, %c0_40, %c0_41] : memref<11x8x65xf32, #tpu.memory_space<vmem>>, vector<1x4x21xf32>
    %57 = vector.shape_cast %56 : vector<1x4x21xf32> to vector<4x21xf32>
    %cst_42 = arith.constant dense<0.000000e+00> : vector<4x312xf32>
    %58 = tpu.matmul %57, %55, %cst_42 {dimension_numbers = #tpu.dot_dimension_numbers<[1], [0], [0], [1], [0, 0, 1, 1], [], []>} : vector<4x21xf32>, vector<21x312xf32>, vector<4x312xf32> -> vector<4x312xf32>
    %cst_43 = arith.constant 0.000000e+00 : f32
    %59 = vector.broadcast %cst_43 : f32 to vector<4x312xf32>
    %60 = arith.maximumf %58, %59 : vector<4x312xf32>
    %cst_44 = arith.constant 0.000000e+00 : f32
    %61 = vector.shape_cast %2 : vector<1x312xi1> to vector<1x312xi1>
    %62 = vector.broadcast %61 : vector<1x312xi1> to vector<4x312xi1>
    %63 = vector.broadcast %cst_44 : f32 to vector<4x312xf32>
    %64 = arith.select %62, %60, %63 : vector<4x312xi1>, vector<4x312xf32>
    %c0_45 = arith.constant 0 : index
    %c3_46 = arith.constant 3 : index
    %65 = vector.load %arg8[%c0_45, %c3_46] : memref<8x319xf32, #tpu.memory_space<vmem>>, vector<4x312xf32>
    tpu.vector_store %arg8[%c0_45, %c3_46], %64 {strides = array<i32>} : memref<8x319xf32, #tpu.memory_space<vmem>>, vector<4x312xf32>,
    %c0_47 = arith.constant 0 : index
    %c0_48 = arith.constant 0 : index
    %66 = vector.load %arg8[%c0_47, %c0_48] : memref<8x319xf32, #tpu.memory_space<vmem>>, vector<4x319xf32>
    %67 = vector.extract_strided_slice %66 {offsets = [0, 2], sizes = [4, 312], strides = [1, 1]} : vector<4x319xf32> to vector<4x312xf32>
    %68 = vector.extract_strided_slice %66 {offsets = [0, 3], sizes = [4, 312], strides = [1, 1]} : vector<4x319xf32> to vector<4x312xf32>
    %69 = vector.extract_strided_slice %66 {offsets = [0, 4], sizes = [4, 312], strides = [1, 1]} : vector<4x319xf32> to vector<4x312xf32>
    %70 = tpu.concatenate %67, %68, %69 in 0 : vector<4x312xf32>, vector<4x312xf32>, vector<4x312xf32> -> vector<12x312xf32>
    %71 = tpu.concatenate %70, %0 in 0 : vector<12x312xf32>, vector<1x312xf32> -> vector<13x312xf32>
    %c2_49 = arith.constant 2 : index
    %c0_50 = arith.constant 0 : index
    %c0_51 = arith.constant 0 : index
    %72 = vector.load %arg2[%c2_49, %c0_50, %c0_51] : memref<11x8x65xf32, #tpu.memory_space<vmem>>, vector<1x4x13xf32>
    %73 = vector.shape_cast %72 : vector<1x4x13xf32> to vector<4x13xf32>
    %cst_52 = arith.constant dense<0.000000e+00> : vector<4x312xf32>
    %74 = tpu.matmul %73, %71, %cst_52 {dimension_numbers = #tpu.dot_dimension_numbers<[1], [0], [0], [1], [0, 0, 1, 1], [], []>} : vector<4x13xf32>, vector<13x312xf32>, vector<4x312xf32> -> vector<4x312xf32>
    %cst_53 = arith.constant 0.000000e+00 : f32
    %75 = vector.broadcast %cst_53 : f32 to vector<4x312xf32>
    %76 = arith.maximumf %74, %75 : vector<4x312xf32>
    %c0_54 = arith.constant 0 : index
    %c0_55 = arith.constant 0 : index
    %77 = vector.load %arg6[%c0_54, %c0_55] : memref<8x319xf32, #tpu.memory_space<vmem>>, vector<3x319xf32>
    %78 = vector.extract_strided_slice %77 {offsets = [0, 3], sizes = [3, 312], strides = [1, 1]} : vector<3x319xf32> to vector<3x312xf32>
    %79 = tpu.concatenate %78, %0 in 0 : vector<3x312xf32>, vector<1x312xf32> -> vector<4x312xf32>
    %c3_56 = arith.constant 3 : index
    %c0_57 = arith.constant 0 : index
    %c0_58 = arith.constant 0 : index
    %80 = vector.load %arg2[%c3_56, %c0_57, %c0_58] : memref<11x8x65xf32, #tpu.memory_space<vmem>>, vector<1x4x4xf32>
    %81 = vector.shape_cast %80 : vector<1x4x4xf32> to vector<4x4xf32>
    %cst_59 = arith.constant dense<0.000000e+00> : vector<4x312xf32>
    %82 = tpu.matmul %81, %79, %cst_59 {dimension_numbers = #tpu.dot_dimension_numbers<[1], [0], [0], [1], [0, 0, 1, 1], [], []>} : vector<4x4xf32>, vector<4x312xf32>, vector<4x312xf32> -> vector<4x312xf32>
    %83 = arith.addf %76, %82 : vector<4x312xf32>
    %cst_60 = arith.constant 0.000000e+00 : f32
    %84 = vector.shape_cast %2 : vector<1x312xi1> to vector<1x312xi1>
    %85 = vector.broadcast %84 : vector<1x312xi1> to vector<4x312xi1>
    %86 = vector.broadcast %cst_60 : f32 to vector<4x312xf32>
    %87 = arith.select %85, %83, %86 : vector<4x312xi1>, vector<4x312xf32>
    %c0_61 = arith.constant 0 : index
    %c3_62 = arith.constant 3 : index
    %88 = vector.load %arg6[%c0_61, %c3_62] : memref<8x319xf32, #tpu.memory_space<vmem>>, vector<4x312xf32>
    tpu.vector_store %arg6[%c0_61, %c3_62], %87 {strides = array<i32>} : memref<8x319xf32, #tpu.memory_space<vmem>>, vector<4x312xf32>,
    %c0_63 = arith.constant 0 : index
    %c0_64 = arith.constant 0 : index
    %89 = vector.load %arg6[%c0_63, %c0_64] : memref<8x319xf32, #tpu.memory_space<vmem>>, vector<4x319xf32>
    %90 = vector.extract_strided_slice %89 {offsets = [0, 0], sizes = [4, 312], strides = [1, 1]} : vector<4x319xf32> to vector<4x312xf32>
    %91 = vector.extract_strided_slice %89 {offsets = [0, 1], sizes = [4, 312], strides = [1, 1]} : vector<4x319xf32> to vector<4x312xf32>
    %92 = vector.extract_strided_slice %89 {offsets = [0, 2], sizes = [4, 312], strides = [1, 1]} : vector<4x319xf32> to vector<4x312xf32>
    %93 = vector.extract_strided_slice %89 {offsets = [0, 3], sizes = [4, 312], strides = [1, 1]} : vector<4x319xf32> to vector<4x312xf32>
    %94 = vector.extract_strided_slice %89 {offsets = [0, 4], sizes = [4, 312], strides = [1, 1]} : vector<4x319xf32> to vector<4x312xf32>
    %95 = vector.extract_strided_slice %89 {offsets = [0, 5], sizes = [4, 312], strides = [1, 1]} : vector<4x319xf32> to vector<4x312xf32>
    %96 = vector.extract_strided_slice %89 {offsets = [0, 6], sizes = [4, 312], strides = [1, 1]} : vector<4x319xf32> to vector<4x312xf32>
    %97 = vector.extract_strided_slice %89 {offsets = [0, 7], sizes = [4, 312], strides = [1, 1]} : vector<4x319xf32> to vector<4x312xf32>
    %98 = tpu.concatenate %90, %91, %92, %93, %94, %95, %96, %97 in 0 : vector<4x312xf32>, vector<4x312xf32>, vector<4x312xf32>, vector<4x312xf32>, vector<4x312xf32>, vector<4x312xf32>, vector<4x312xf32>, vector<4x312xf32> -> vector<32x312xf32>
    %99 = tpu.concatenate %98, %0 in 0 : vector<32x312xf32>, vector<1x312xf32> -> vector<33x312xf32>
    %c4_65 = arith.constant 4 : index
    %c0_66 = arith.constant 0 : index
    %c0_67 = arith.constant 0 : index
    %100 = vector.load %arg2[%c4_65, %c0_66, %c0_67] : memref<11x8x65xf32, #tpu.memory_space<vmem>>, vector<1x8x33xf32>
    %101 = vector.shape_cast %100 : vector<1x8x33xf32> to vector<8x33xf32>
    %cst_68 = arith.constant dense<0.000000e+00> : vector<8x312xf32>
    %102 = tpu.matmul %101, %99, %cst_68 {dimension_numbers = #tpu.dot_dimension_numbers<[1], [0], [0], [1], [0, 0, 1, 1], [], []>} : vector<8x33xf32>, vector<33x312xf32>, vector<8x312xf32> -> vector<8x312xf32>
    %cst_69 = arith.constant 0.000000e+00 : f32
    %103 = vector.broadcast %cst_69 : f32 to vector<8x312xf32>
    %104 = arith.maximumf %102, %103 : vector<8x312xf32>
    %cst_70 = arith.constant 0.000000e+00 : f32
    %105 = vector.shape_cast %2 : vector<1x312xi1> to vector<1x312xi1>
    %106 = vector.broadcast %105 : vector<1x312xi1> to vector<8x312xi1>
    %107 = vector.broadcast %cst_70 : f32 to vector<8x312xf32>
    %108 = arith.select %106, %104, %107 : vector<8x312xi1>, vector<8x312xf32>
    %c0_71 = arith.constant 0 : index
    %c3_72 = arith.constant 3 : index
    %109 = vector.load %arg7[%c0_71, %c3_72] : memref<8x319xf32, #tpu.memory_space<vmem>>, vector<8x312xf32>
    tpu.vector_store %arg7[%c0_71, %c3_72], %108 {strides = array<i32>} : memref<8x319xf32, #tpu.memory_space<vmem>>, vector<8x312xf32>,
    %c0_73 = arith.constant 0 : index
    %c0_74 = arith.constant 0 : index
    %110 = vector.load %arg7[%c0_73, %c0_74] : memref<8x319xf32, #tpu.memory_space<vmem>>, vector<8x319xf32>
    %111 = vector.extract_strided_slice %110 {offsets = [0, 1], sizes = [8, 312], strides = [1, 1]} : vector<8x319xf32> to vector<8x312xf32>
    %112 = vector.extract_strided_slice %110 {offsets = [0, 2], sizes = [8, 312], strides = [1, 1]} : vector<8x319xf32> to vector<8x312xf32>
    %113 = vector.extract_strided_slice %110 {offsets = [0, 3], sizes = [8, 312], strides = [1, 1]} : vector<8x319xf32> to vector<8x312xf32>
    %114 = vector.extract_strided_slice %110 {offsets = [0, 4], sizes = [8, 312], strides = [1, 1]} : vector<8x319xf32> to vector<8x312xf32>
    %115 = vector.extract_strided_slice %110 {offsets = [0, 5], sizes = [8, 312], strides = [1, 1]} : vector<8x319xf32> to vector<8x312xf32>
    %116 = tpu.concatenate %111, %112, %113, %114, %115 in 0 : vector<8x312xf32>, vector<8x312xf32>, vector<8x312xf32>, vector<8x312xf32>, vector<8x312xf32> -> vector<40x312xf32>
    %117 = tpu.concatenate %116, %0 in 0 : vector<40x312xf32>, vector<1x312xf32> -> vector<41x312xf32>
    %c5_75 = arith.constant 5 : index
    %c0_76 = arith.constant 0 : index
    %c0_77 = arith.constant 0 : index
    %118 = vector.load %arg2[%c5_75, %c0_76, %c0_77] : memref<11x8x65xf32, #tpu.memory_space<vmem>>, vector<1x8x41xf32>
    %119 = vector.shape_cast %118 : vector<1x8x41xf32> to vector<8x41xf32>
    %cst_78 = arith.constant dense<0.000000e+00> : vector<8x312xf32>
    %120 = tpu.matmul %119, %117, %cst_78 {dimension_numbers = #tpu.dot_dimension_numbers<[1], [0], [0], [1], [0, 0, 1, 1], [], []>} : vector<8x41xf32>, vector<41x312xf32>, vector<8x312xf32> -> vector<8x312xf32>
    %cst_79 = arith.constant 0.000000e+00 : f32
    %121 = vector.broadcast %cst_79 : f32 to vector<8x312xf32>
    %122 = arith.maximumf %120, %121 : vector<8x312xf32>
    %cst_80 = arith.constant 0.000000e+00 : f32
    %123 = vector.shape_cast %2 : vector<1x312xi1> to vector<1x312xi1>
    %124 = vector.broadcast %123 : vector<1x312xi1> to vector<8x312xi1>
    %125 = vector.broadcast %cst_80 : f32 to vector<8x312xf32>
    %126 = arith.select %124, %122, %125 : vector<8x312xi1>, vector<8x312xf32>
    %c0_81 = arith.constant 0 : index
    %c3_82 = arith.constant 3 : index
    %127 = vector.load %arg8[%c0_81, %c3_82] : memref<8x319xf32, #tpu.memory_space<vmem>>, vector<8x312xf32>
    tpu.vector_store %arg8[%c0_81, %c3_82], %126 {strides = array<i32>} : memref<8x319xf32, #tpu.memory_space<vmem>>, vector<8x312xf32>,
    %c0_83 = arith.constant 0 : index
    %c0_84 = arith.constant 0 : index
    %128 = vector.load %arg8[%c0_83, %c0_84] : memref<8x319xf32, #tpu.memory_space<vmem>>, vector<8x319xf32>
    %129 = vector.extract_strided_slice %128 {offsets = [0, 2], sizes = [8, 312], strides = [1, 1]} : vector<8x319xf32> to vector<8x312xf32>
    %130 = vector.extract_strided_slice %128 {offsets = [0, 3], sizes = [8, 312], strides = [1, 1]} : vector<8x319xf32> to vector<8x312xf32>
    %131 = vector.extract_strided_slice %128 {offsets = [0, 4], sizes = [8, 312], strides = [1, 1]} : vector<8x319xf32> to vector<8x312xf32>
    %132 = tpu.concatenate %129, %130, %131 in 0 : vector<8x312xf32>, vector<8x312xf32>, vector<8x312xf32> -> vector<24x312xf32>
    %133 = tpu.concatenate %132, %0 in 0 : vector<24x312xf32>, vector<1x312xf32> -> vector<25x312xf32>
    %c6_85 = arith.constant 6 : index
    %c0_86 = arith.constant 0 : index
    %c0_87 = arith.constant 0 : index
    %134 = vector.load %arg2[%c6_85, %c0_86, %c0_87] : memref<11x8x65xf32, #tpu.memory_space<vmem>>, vector<1x8x25xf32>
    %135 = vector.shape_cast %134 : vector<1x8x25xf32> to vector<8x25xf32>
    %cst_88 = arith.constant dense<0.000000e+00> : vector<8x312xf32>
    %136 = tpu.matmul %135, %133, %cst_88 {dimension_numbers = #tpu.dot_dimension_numbers<[1], [0], [0], [1], [0, 0, 1, 1], [], []>} : vector<8x25xf32>, vector<25x312xf32>, vector<8x312xf32> -> vector<8x312xf32>
    %cst_89 = arith.constant 0.000000e+00 : f32
    %137 = vector.broadcast %cst_89 : f32 to vector<8x312xf32>
    %138 = arith.maximumf %136, %137 : vector<8x312xf32>
    %c0_90 = arith.constant 0 : index
    %c0_91 = arith.constant 0 : index
    %139 = vector.load %arg6[%c0_90, %c0_91] : memref<8x319xf32, #tpu.memory_space<vmem>>, vector<4x319xf32>
    %140 = vector.extract_strided_slice %139 {offsets = [0, 3], sizes = [4, 312], strides = [1, 1]} : vector<4x319xf32> to vector<4x312xf32>
    %141 = tpu.concatenate %140, %0 in 0 : vector<4x312xf32>, vector<1x312xf32> -> vector<5x312xf32>
    %c7_92 = arith.constant 7 : index
    %c0_93 = arith.constant 0 : index
    %c0_94 = arith.constant 0 : index
    %142 = vector.load %arg2[%c7_92, %c0_93, %c0_94] : memref<11x8x65xf32, #tpu.memory_space<vmem>>, vector<1x8x5xf32>
    %143 = vector.shape_cast %142 : vector<1x8x5xf32> to vector<8x5xf32>
    %cst_95 = arith.constant dense<0.000000e+00> : vector<8x312xf32>
    %144 = tpu.matmul %143, %141, %cst_95 {dimension_numbers = #tpu.dot_dimension_numbers<[1], [0], [0], [1], [0, 0, 1, 1], [], []>} : vector<8x5xf32>, vector<5x312xf32>, vector<8x312xf32> -> vector<8x312xf32>
    %145 = arith.addf %138, %144 : vector<8x312xf32>
    %cst_96 = arith.constant 0.000000e+00 : f32
    %146 = vector.shape_cast %2 : vector<1x312xi1> to vector<1x312xi1>
    %147 = vector.broadcast %146 : vector<1x312xi1> to vector<8x312xi1>
    %148 = vector.broadcast %cst_96 : f32 to vector<8x312xf32>
    %149 = arith.select %147, %145, %148 : vector<8x312xi1>, vector<8x312xf32>
    %c0_97 = arith.constant 0 : index
    %c3_98 = arith.constant 3 : index
    %150 = vector.load %arg6[%c0_97, %c3_98] : memref<8x319xf32, #tpu.memory_space<vmem>>, vector<8x312xf32>
    tpu.vector_store %arg6[%c0_97, %c3_98], %149 {strides = array<i32>} : memref<8x319xf32, #tpu.memory_space<vmem>>, vector<8x312xf32>,
    %c0_99 = arith.constant 0 : index
    %c0_100 = arith.constant 0 : index
    %151 = vector.load %arg6[%c0_99, %c0_100] : memref<8x319xf32, #tpu.memory_space<vmem>>, vector<8x319xf32>
    %152 = vector.extract_strided_slice %151 {offsets = [0, 0], sizes = [8, 312], strides = [1, 1]} : vector<8x319xf32> to vector<8x312xf32>
    %153 = vector.extract_strided_slice %151 {offsets = [0, 1], sizes = [8, 312], strides = [1, 1]} : vector<8x319xf32> to vector<8x312xf32>
    %154 = vector.extract_strided_slice %151 {offsets = [0, 2], sizes = [8, 312], strides = [1, 1]} : vector<8x319xf32> to vector<8x312xf32>
    %155 = vector.extract_strided_slice %151 {offsets = [0, 3], sizes = [8, 312], strides = [1, 1]} : vector<8x319xf32> to vector<8x312xf32>
    %156 = vector.extract_strided_slice %151 {offsets = [0, 4], sizes = [8, 312], strides = [1, 1]} : vector<8x319xf32> to vector<8x312xf32>
    %157 = vector.extract_strided_slice %151 {offsets = [0, 5], sizes = [8, 312], strides = [1, 1]} : vector<8x319xf32> to vector<8x312xf32>
    %158 = vector.extract_strided_slice %151 {offsets = [0, 6], sizes = [8, 312], strides = [1, 1]} : vector<8x319xf32> to vector<8x312xf32>
    %159 = vector.extract_strided_slice %151 {offsets = [0, 7], sizes = [8, 312], strides = [1, 1]} : vector<8x319xf32> to vector<8x312xf32>
    %160 = tpu.concatenate %152, %153, %154, %155, %156, %157, %158, %159 in 0 : vector<8x312xf32>, vector<8x312xf32>, vector<8x312xf32>, vector<8x312xf32>, vector<8x312xf32>, vector<8x312xf32>, vector<8x312xf32>, vector<8x312xf32> -> vector<64x312xf32>
    %161 = tpu.concatenate %160, %0 in 0 : vector<64x312xf32>, vector<1x312xf32> -> vector<65x312xf32>
    %c8 = arith.constant 8 : index
    %c0_101 = arith.constant 0 : index
    %c0_102 = arith.constant 0 : index
    %162 = vector.load %arg2[%c8, %c0_101, %c0_102] : memref<11x8x65xf32, #tpu.memory_space<vmem>>, vector<1x8x65xf32>
    %163 = vector.shape_cast %162 : vector<1x8x65xf32> to vector<8x65xf32>
    %cst_103 = arith.constant dense<0.000000e+00> : vector<8x312xf32>
    %164 = tpu.matmul %163, %161, %cst_103 {dimension_numbers = #tpu.dot_dimension_numbers<[1], [0], [0], [1], [0, 0, 1, 1], [], []>} : vector<8x65xf32>, vector<65x312xf32>, vector<8x312xf32> -> vector<8x312xf32>
    %cst_104 = arith.constant 0.000000e+00 : f32
    %165 = vector.broadcast %cst_104 : f32 to vector<8x312xf32>
    %166 = arith.maximumf %164, %165 : vector<8x312xf32>
    %cst_105 = arith.constant 0.000000e+00 : f32
    %167 = vector.shape_cast %2 : vector<1x312xi1> to vector<1x312xi1>
    %168 = vector.broadcast %167 : vector<1x312xi1> to vector<8x312xi1>
    %169 = vector.broadcast %cst_105 : f32 to vector<8x312xf32>
    %170 = arith.select %168, %166, %169 : vector<8x312xi1>, vector<8x312xf32>
    %c0_106 = arith.constant 0 : index
    %c3_107 = arith.constant 3 : index
    %171 = vector.load %arg7[%c0_106, %c3_107] : memref<8x319xf32, #tpu.memory_space<vmem>>, vector<8x312xf32>
    tpu.vector_store %arg7[%c0_106, %c3_107], %170 {strides = array<i32>} : memref<8x319xf32, #tpu.memory_space<vmem>>, vector<8x312xf32>,
    %c0_108 = arith.constant 0 : index
    %c0_109 = arith.constant 0 : index
    %172 = vector.load %arg7[%c0_108, %c0_109] : memref<8x319xf32, #tpu.memory_space<vmem>>, vector<8x319xf32>
    %173 = vector.extract_strided_slice %172 {offsets = [0, 1], sizes = [8, 312], strides = [1, 1]} : vector<8x319xf32> to vector<8x312xf32>
    %174 = vector.extract_strided_slice %172 {offsets = [0, 2], sizes = [8, 312], strides = [1, 1]} : vector<8x319xf32> to vector<8x312xf32>
    %175 = vector.extract_strided_slice %172 {offsets = [0, 3], sizes = [8, 312], strides = [1, 1]} : vector<8x319xf32> to vector<8x312xf32>
    %176 = vector.extract_strided_slice %172 {offsets = [0, 4], sizes = [8, 312], strides = [1, 1]} : vector<8x319xf32> to vector<8x312xf32>
    %177 = vector.extract_strided_slice %172 {offsets = [0, 5], sizes = [8, 312], strides = [1, 1]} : vector<8x319xf32> to vector<8x312xf32>
    %178 = tpu.concatenate %173, %174, %175, %176, %177 in 0 : vector<8x312xf32>, vector<8x312xf32>, vector<8x312xf32>, vector<8x312xf32>, vector<8x312xf32> -> vector<40x312xf32>
    %179 = tpu.concatenate %178, %0 in 0 : vector<40x312xf32>, vector<1x312xf32> -> vector<41x312xf32>
    %c9 = arith.constant 9 : index
    %c0_110 = arith.constant 0 : index
    %c0_111 = arith.constant 0 : index
    %180 = vector.load %arg2[%c9, %c0_110, %c0_111] : memref<11x8x65xf32, #tpu.memory_space<vmem>>, vector<1x8x41xf32>
    %181 = vector.shape_cast %180 : vector<1x8x41xf32> to vector<8x41xf32>
    %cst_112 = arith.constant dense<0.000000e+00> : vector<8x312xf32>
    %182 = tpu.matmul %181, %179, %cst_112 {dimension_numbers = #tpu.dot_dimension_numbers<[1], [0], [0], [1], [0, 0, 1, 1], [], []>} : vector<8x41xf32>, vector<41x312xf32>, vector<8x312xf32> -> vector<8x312xf32>
    %cst_113 = arith.constant 0.000000e+00 : f32
    %183 = vector.broadcast %cst_113 : f32 to vector<8x312xf32>
    %184 = arith.maximumf %182, %183 : vector<8x312xf32>
    %cst_114 = arith.constant 0.000000e+00 : f32
    %185 = vector.shape_cast %2 : vector<1x312xi1> to vector<1x312xi1>
    %186 = vector.broadcast %185 : vector<1x312xi1> to vector<8x312xi1>
    %187 = vector.broadcast %cst_114 : f32 to vector<8x312xf32>
    %188 = arith.select %186, %184, %187 : vector<8x312xi1>, vector<8x312xf32>
    %c0_115 = arith.constant 0 : index
    %c3_116 = arith.constant 3 : index
    %189 = vector.load %arg8[%c0_115, %c3_116] : memref<8x319xf32, #tpu.memory_space<vmem>>, vector<8x312xf32>
    tpu.vector_store %arg8[%c0_115, %c3_116], %188 {strides = array<i32>} : memref<8x319xf32, #tpu.memory_space<vmem>>, vector<8x312xf32>,
    %c0_117 = arith.constant 0 : index
    %c0_118 = arith.constant 0 : index
    %190 = vector.load %arg8[%c0_117, %c0_118] : memref<8x319xf32, #tpu.memory_space<vmem>>, vector<8x319xf32>
    %191 = vector.extract_strided_slice %190 {offsets = [0, 2], sizes = [8, 312], strides = [1, 1]} : vector<8x319xf32> to vector<8x312xf32>
    %192 = vector.extract_strided_slice %190 {offsets = [0, 3], sizes = [8, 312], strides = [1, 1]} : vector<8x319xf32> to vector<8x312xf32>
    %193 = vector.extract_strided_slice %190 {offsets = [0, 4], sizes = [8, 312], strides = [1, 1]} : vector<8x319xf32> to vector<8x312xf32>
    %194 = tpu.concatenate %191, %192, %193 in 0 : vector<8x312xf32>, vector<8x312xf32>, vector<8x312xf32> -> vector<24x312xf32>
    %195 = tpu.concatenate %194, %0 in 0 : vector<24x312xf32>, vector<1x312xf32> -> vector<25x312xf32>
    %c10 = arith.constant 10 : index
    %c0_119 = arith.constant 0 : index
    %c0_120 = arith.constant 0 : index
    %196 = vector.load %arg2[%c10, %c0_119, %c0_120] : memref<11x8x65xf32, #tpu.memory_space<vmem>>, vector<1x8x25xf32>
    %197 = vector.shape_cast %196 : vector<1x8x25xf32> to vector<8x25xf32>
    %cst_121 = arith.constant dense<0.000000e+00> : vector<8x312xf32>
    %198 = tpu.matmul %197, %195, %cst_121 {dimension_numbers = #tpu.dot_dimension_numbers<[1], [0], [0], [1], [0, 0, 1, 1], [], []>} : vector<8x25xf32>, vector<25x312xf32>, vector<8x312xf32> -> vector<8x312xf32>
    %cst_122 = arith.constant 0.000000e+00 : f32
    %199 = vector.broadcast %cst_122 : f32 to vector<8x312xf32>
    %200 = arith.maximumf %198, %199 : vector<8x312xf32>
    %cst_123 = arith.constant 0.000000e+00 : f32
    %201 = vector.shape_cast %2 : vector<1x312xi1> to vector<1x312xi1>
    %202 = vector.broadcast %201 : vector<1x312xi1> to vector<8x312xi1>
    %203 = vector.broadcast %cst_123 : f32 to vector<8x312xf32>
    %204 = arith.select %202, %200, %203 : vector<8x312xi1>, vector<8x312xf32>
    %c0_124 = arith.constant 0 : index
    %c0_125 = arith.constant 0 : index
    %205 = vector.load %arg4[%c0_124, %c0_125] : memref<312x8xf32, #tpu.memory_space<vmem>>, vector<312x8xf32>
    %cst_126 = arith.constant dense<0.000000e+00> : vector<8x8xf32>
    %206 = tpu.matmul %204, %205, %cst_126 {dimension_numbers = #tpu.dot_dimension_numbers<[1], [0], [0], [1], [0, 0, 1, 1], [], []>} : vector<8x312xf32>, vector<312x8xf32>, vector<8x8xf32> -> vector<8x8xf32>
    %c0_127 = arith.constant 0 : index
    %c0_128 = arith.constant 0 : index
    %c0_129 = arith.constant 0 : index
    %207 = vector.load %arg5[%c0_127, %c0_128, %c0_129] : memref<1x8x8xf32, #tpu.memory_space<vmem>>, vector<1x8x8xf32>
    %208 = vector.shape_cast %207 : vector<1x8x8xf32> to vector<8x8xf32>
    %209 = vector.shape_cast %206 : vector<8x8xf32> to vector<1x8x8xf32>
    tpu.vector_store %arg5[%c0_127, %c0_128, %c0_129], %209 {strides = array<i32>} : memref<1x8x8xf32, #tpu.memory_space<vmem>>, vector<1x8x8xf32>,
    return
  }
  func.func @transform_0(%arg0: i32) -> (i32, i32, i32) {
    %c0_i32 = arith.constant 0 : i32
    %c0_i32_0 = arith.constant 0 : i32
    %c0_i32_1 = arith.constant 0 : i32
    return %c0_i32, %arg0, %c0_i32_0 : i32, i32, i32
  }
  func.func @transform_1(%arg0: i32) -> (i32, i32, i32) {
    %c0_i32 = arith.constant 0 : i32
    %c0_i32_0 = arith.constant 0 : i32
    %c0_i32_1 = arith.constant 0 : i32
    %c0_i32_2 = arith.constant 0 : i32
    return %c0_i32, %c0_i32_0, %c0_i32_1 : i32, i32, i32
  }
  func.func @transform_2(%arg0: i32) -> (i32, i32) {
    %c0_i32 = arith.constant 0 : i32
    %c0_i32_0 = arith.constant 0 : i32
    %c0_i32_1 = arith.constant 0 : i32
    return %c0_i32, %c0_i32_0 : i32, i32
  }
  func.func @transform_3(%arg0: i32) -> (i32, i32) {
    %c0_i32 = arith.constant 0 : i32
    %c0_i32_0 = arith.constant 0 : i32
    %c0_i32_1 = arith.constant 0 : i32
    return %c0_i32, %c0_i32_0 : i32, i32
  }
  func.func @transform_4(%arg0: i32) -> (i32, i32, i32) {
    %c0_i32 = arith.constant 0 : i32
    %c0_i32_0 = arith.constant 0 : i32
    %c0_i32_1 = arith.constant 0 : i32
    return %arg0, %c0_i32, %c0_i32_0 : i32, i32, i32
  }
}

</mosaic_0001>

<bundles_post_ra>
// kernel: tpu_custom_call.1
= control target key start
LH: loop header
LB: loop body
LE: loop exit
PB: predicated region body
PF: predicated region fallthrough
CT: control target
= control target key end

     0   :  { %9 = vsyncpa [#allocation7], 0  ;;  %s5383_s0 = inlined_call_operand.vmem [shape: f32[3,16,39], index: 0, kind: input, shape index: {}]   ;;  %s5384_s1 = inlined_call_operand.vmem [shape: f32[11,8,65], index: 1, kind: input, shape index: {}]   ;;  %s5385_s2 = inlined_call_operand.vmem [shape: f32[1,312], index: 2, kind: input, shape index: {}]   ;;  %s5386_s3 = inlined_call_operand.vmem [shape: f32[312,8], index: 3, kind: input, shape index: {}]   ;;  %s5387_s4 = inlined_call_operand.hbm [shape: f32[2,8,8], index: 4, kind: output, shape index: {}]  }
   0x1   :  { %11 = vsyncpa [#allocation7 + $0x1], 0  ;;  %s4363_s15 = smov 0   ;;  %s4365_s16 = smov 0  }
   0x2   :  { %s4367_s17 = smov 0   ;;  %s4369_s18 = smov 0  }
   0x3 LB: > { %s3346_s19 = sadd.s32 4294967295, %s4313_s18   ;;  %s3347_s20 = sadd.s32 4294967294, %s4313_s18   ;;  %s4313_s18 = sphi %s4369_s18, %s5438_s18   ;;  %s4309_s17 = sphi %s4367_s17, %s5437_s17   ;;  %s4305_s16 = sphi %s4365_s16, %s5436_s16   ;;  %s4301_s15 = sphi %s4363_s15, %s5435_s15  }
   0x4   : > { %s4386_s21 = sadd.s32 1, %s4313_s18   ;;  %s24_s22 = sadd.s32 1, %s4309_s17 }
   0x5   : > { %s21_s23 = ssub.s32 %s4313_s18, %s4386_s21  ;;  %p31_p0 = scmp.ne.s32.totalorder %s4309_s17, %s4305_s16 }
   0x6   : > { %p22_p1 = scmp.eq.s32.totalorder %s21_s23, 0  ;;  %p32_p2 = scmp.eq.s32.totalorder %s4313_s18, 0 }
   0x7   : > { %p124_p3 = scmp.eq.s32.totalorder %s3346_s19, 1  ;;  %p129_p4 = scmp.ne.s32.totalorder %s4305_s16, %s4301_s15 }
   0x8   : > { %s4399_s24 = scalar_select %p22_p1, %s4309_s17, %s24_s22  }
   0x9   : > { %p33_p5 = por %p32_p2, %p31_p0  ;;  %p4401_p6 = por %p124_p3, %p31_p0 }
   0xa   : > { %p130_p7 = scmp.eq.s32.totalorder %s3347_s20, 1  ;;  %p3349_p9 = scmp.ge.s32.totalorder %s4313_s18, 2 }
   0xc   : > { %p4405_p8 = por %p130_p7, %p129_p4  ;;  %155 = sbr.rel (%p3349_p9) target bundleno = 26 (0x1a), region = 28 }
  0x13   : > { %158 = sbr.rel (!%p33_p5) target bundleno = 26 (0x1a), region = 32  ;;  %s160_s27 = sand.u32 (%p33_p5), 1, %s4309_s17  }
  0x14   : > { %s3350_s28 = sshll.u32 (%p33_p5), %s4313_s18, 3  ;;  %s3863_s29 = smul.u32 (%p33_p5), 24, %s160_s27 }
  0x15   : > { %s164_s6 = scalar_lea.vmem (%p33_p5), %s5383_s0, %s3350_s28 }
  0x16   : > { %v196_v0 = vld [vmem:[%s164_s6] sm:$0xff] (%p33_p5)  ;;  %v198_v1 = vld [vmem:[%s164_s6 + $0x10] sm:$0xff] (%p33_p5)  ;;  %s162_s7 = scalar_lea.vmem (%p33_p5), [#allocation5], %s3863_s29 }
  0x17   : > { %v200_v2 = vld [vmem:[%s164_s6 + $0x20] sm:$0xff] (%p33_p5)  ;;  %197 = vst [vmem:[%s162_s7] sm:$0xff] (%p33_p5), %v196_v0  ;;  %199 = vst [vmem:[%s162_s7 + $0x8] sm:$0xff] (%p33_p5), %v198_v1 }
  0x18   : > { %201 = vst [vmem:[%s162_s7 + $0x10] sm:$0xff] (%p33_p5), %v200_v2 }
  0x1a PF: > { %p3351_p10 = scmp.ge.s32.totalorder %s4313_s18, 1  ;;  %p206_p11 = scmp.lt.s32.totalorder %s4313_s18, 3 }
  0x1c   : > { %p207_p12 = pnand %p3351_p10, %p206_p11 }
  0x1d   : > { %s4420_s8 = sand.u32 (!%p207_p12), 1, %s4305_s16   ;;  %vm247_vm0 = vcmask (!%p207_p12), 1041409   ;;  %vm250_vm1 = vcmask (!%p207_p12), 1042434   ;;  %s4315_s11 = smov (!%p207_p12), 31   ;;  %vm302_vm2 = vcmask (!%p207_p12), 247808   ;;  %vm317_vm3 = vcmask (!%p207_p12), 567544  }
  0x1e   : > { %210 = sbr.rel (%p207_p12) target bundleno = 5354 (0x14ea), region = 70  ;;  %s4316_s12 = smov (!%p207_p12), 120   ;;  %vm255_vm4 = vcmask (!%p207_p12), 337944   ;;  %vm270_vm5 = vcmask (!%p207_p12), 657744   ;;  %vm349_vm6 = vcmask (!%p207_p12), 157696   ;;  %vm332_vm7 = vcmask (!%p207_p12), 887344  }
  0x1f   : > { %s3864_s9 = smul.u32 (!%p207_p12), 24, %s4420_s8  ;;  %s4317_s13 = smov (!%p207_p12), 42   ;;  %vm347_vm8 = vcmask (!%p207_p12), 1043304   ;;  %vm364_vm9 = vcmask (!%p207_p12), 477344   ;;  %vm285_vm10 = vcmask (!%p207_p12), 977544   ;;  %vm300_vm11 = vcmask (!%p207_p12), 1043392  }
  0x20   : > { %s4318_s14 = smov (!%p207_p12), 3   ;;  %s4319_s20 = smov (!%p207_p12), 109   ;;  %vm5388_vm12 = vcmask (!%p207_p12), 1040384   ;;  %vm381_vm13 = vcmask (!%p207_p12), 1039360   ;;  %vm396_vm14 = vcmask (!%p207_p12), 1031168   ;;  %vm411_vm15 = vcmask (!%p207_p12), 1022976  }
  0x21   : > { %s4423_s10 = scalar_lea.vmem (!%p207_p12), [#allocation5], %s3864_s9  ;;  %s4320_s22 = smov (!%p207_p12), 70  }
  0x22   : > { %v304_v3 = vld [vmem:[%s4423_s10 + $0x4] sm:$0x1] (!%p207_p12)  ;;  %v305_v4 = vld [vmem:[%s4423_s10 + $0xc] sm:$0x1] (!%p207_p12)  ;;  %v306_v5 = vld [vmem:[%s4423_s10 + $0x14] sm:$0x1] (!%p207_p12) }
  0x23   : > { %v310_v6 = vrot.slane (!%p207_p12), %v305_v4, 7  ;;  %v312_v7 = vrot.slane (!%p207_p12), %v306_v5, 6  ;;  %v287_v8 = vld [vmem:[%s4423_s10 + $0x3] sm:$0x1] (!%p207_p12)  ;;  %v288_v9 = vld [vmem:[%s4423_s10 + $0xb] sm:$0x1] (!%p207_p12) }
  0x24   : > { %v289_v10 = vld [vmem:[%s4423_s10 + $0x13] sm:$0x1] (!%p207_p12)  ;;  %v293_v11 = vrot.slane (!%p207_p12), %v288_v9, 7  ;;  %v257_v12 = vld [vmem:[%s4423_s10 + $0x1] sm:$0x1] (!%p207_p12)  ;;  %s4321_s23 = smov (!%p207_p12), 20  }
  0x25   : > { %v311_v13 = vsel %vm247_vm0, %v310_v6, %v304_v3  ;;  %v295_v14 = vrot.slane %v289_v10, 6  ;;  %v258_v15 = vld [vmem:[%s4423_s10 + $0x9] sm:$0x1]  ;;  %v259_v16 = vld [vmem:[%s4423_s10 + $0x11] sm:$0x1]  ;;  %s4322_s27 = smov 81  }
  0x26   : > { %v313_v17 = vsel %vm250_vm1, %v312_v7, %v311_v13  ;;  %v294_v18 = vsel %vm247_vm0, %v293_v11, %v287_v8  ;;  %v263_v19 = vrot.slane %v258_v15, 7  ;;  %v265_v20 = vrot.slane %v259_v16, 6  ;;  %v240_v21 = vld [vmem:[%s4423_s10] sm:$0x1]  ;;  %v241_v22 = vld [vmem:[%s4423_s10 + $0x8] sm:$0x1] }
  0x27   : > { %314 = vrot.lane.b32.xlu1 %v313_v17, %s4315_s11  ;;  %v296_v23 = vsel %vm250_vm1, %v295_v14, %v294_v18  ;;  %v242_v24 = vld [vmem:[%s4423_s10 + $0x10] sm:$0x1]  ;;  %v246_v25 = vrot.slane %v241_v22, 7  ;;  %v334_v26 = vld [vmem:[%s4423_s10 + $0x6] sm:$0x1]  ;;  %s4323_s28 = smov 125  }
  0x28   : > { %297 = vrot.lane.b32.xlu0 %v296_v23, %s4316_s12  ;;  %v264_v27 = vsel %vm247_vm0, %v263_v19, %v257_v12  ;;  %v249_v28 = vrot.slane %v242_v24, 6  ;;  %v335_v29 = vld [vmem:[%s4423_s10 + $0xe] sm:$0x1]  ;;  %v336_v30 = vld [vmem:[%s4423_s10 + $0x16] sm:$0x1]  ;;  %s4324_s29 = smov 126  }
  0x29   : > { %v266_v31 = vsel %vm250_vm1, %v265_v20, %v264_v27  ;;  %v248_v32 = vsel %vm247_vm0, %v246_v25, %v240_v21  ;;  %v340_v33 = vrot.slane %v335_v29, 7  ;;  %v342_v34 = vrot.slane %v336_v30, 6  ;;  %v319_v35 = vld [vmem:[%s4423_s10 + $0x5] sm:$0x1]  ;;  %v320_v36 = vld [vmem:[%s4423_s10 + $0xd] sm:$0x1] }
  0x2a   : > { %v251_v37 = vsel %vm250_vm1, %v249_v28, %v248_v32  ;;  %v321_v38 = vld [vmem:[%s4423_s10 + $0x15] sm:$0x1]  ;;  %v325_v39 = vrot.slane %v320_v36, 7  ;;  %v351_v40 = vld [vmem:[%s4423_s10 + $0x7] sm:$0x1]  ;;  %s4325_s30 = smov 127  }
  0x2b   : > { %267 = vrot.lane.b32.xlu1 %v266_v31, %s4317_s13  ;;  %v341_v41 = vsel %vm247_vm0, %v340_v33, %v334_v26  ;;  %v327_v42 = vrot.slane %v321_v38, 6  ;;  %v352_v43 = vld [vmem:[%s4423_s10 + $0xf] sm:$0x1]  ;;  %v353_v44 = vld [vmem:[%s4423_s10 + $0x17] sm:$0x1]  ;;  %s4326_s5 = smov 124  }
  0x2c   : > { %252 = vrot.lane.b32.xlu0 %v251_v37, %s4318_s14  ;;  %v343_v45 = vsel %vm250_vm1, %v342_v34, %v341_v41  ;;  %v326_v46 = vsel %vm247_vm0, %v325_v39, %v319_v35  ;;  %v357_v47 = vrot.slane %v352_v43, 7  ;;  %v359_v48 = vrot.slane %v353_v44, 6  ;;  %v272_v49 = vld [vmem:[%s4423_s10 + $0x2] sm:$0x1]  ;;  %v273_v50 = vld [vmem:[%s4423_s10 + $0xa] sm:$0x1] }
  0x2d   : > { %v328_v51 = vsel %vm250_vm1, %v327_v42, %v326_v46  ;;  %v274_v52 = vld [vmem:[%s4423_s10 + $0x12] sm:$0x1]  ;;  %v278_v53 = vrot.slane %v273_v50, 7  ;;  %s4327_s6 = smov 123   ;;  %v4328_v31 = vmov 0.0   ;;  %s4329_s7 = smov 122   ;;  %v506_v43 = vlaneseq }
  0x2e   : > { %v358_v54 = vsel %vm247_vm0, %v357_v47, %v351_v40  ;;  %v280_v55 = vrot.slane %v274_v52, 6  ;;  %593 = vmatprep.mubr.f32.mxu1 %v4328_v31  ;;  %901 = vmatprep.mubr.f32.mxu0 %v4328_v31  ;;  %s4330_s9 = smov 121  }
  0x2f   : > { %344 = vrot.lane.b32.xlu1 %v343_v45, %s4319_s20  ;;  %v279_v56 = vsel %vm247_vm0, %v278_v53, %v272_v49  ;;  %v360_v57 = vsel %vm250_vm1, %v359_v48, %v358_v54  ;;  %vm5394_vm0 = vcmask 1014784   ;;  %v4527_v54 = vshrl.u32 %v506_v43, 7  ;;  %s4335_s20 = smov 1  }
  0x30   : > { %329 = vrot.lane.b32.xlu0 %v328_v51, %s4320_s22  ;;  %v281_v58 = vsel %vm250_vm1, %v280_v55, %v279_v56  ;;  %vm489_vm1 = vcmask 1043456  }
  0x33   : > { %361 = vrot.lane.b32.xlu1 %v360_v57, %s4321_s23 }
  0x34   : > { %282 = vrot.lane.b32.xlu0 %v281_v58, %s4322_s27  ;;  %s4336_s27 = smov 2  }
  0x99   : > { %v315_v59 = vpop.permute.xlu1 %314 }
  0x9a   : > { %v298_v60 = vpop.permute.xlu0 %297 }
  0x9b   : > { %303 = vst.msk [vmem:[#allocation2 + $0x8] sm:$0x7] %vm302_vm2, %v298_v60  ;;  %vm477_vm2 = vcmask 1042432  }
  0x9c   : > { %318 = vst.msk [vmem:[#allocation2 + $0x8] sm:$0x7] %vm317_vm3, %v315_v59  ;;  %vm481_vm3 = vcmask 1045504  }
  0x9d   : > { %v268_v61 = vpop.permute.xlu1 %267 }
  0x9e   : > { %v253_v62 = vpop.permute.xlu0 %252 }
  0x9f   : > { %256 = vst.msk [vmem:[#allocation2] sm:$0x7] %vm255_vm4, %v253_v62  ;;  %vm5391_vm4 = vcmask 998400  }
  0xa0   : > { %271 = vst.msk [vmem:[#allocation2] sm:$0x7] %vm270_vm5, %v268_v61  ;;  %vm5392_vm5 = vcmask 1006592  }
  0xa1   : > { %v345_v63 = vpop.permute.xlu1 %344 }
  0xa2   : > { %350 = vst.msk [vmem:[#allocation2 + $0x10] sm:$0x7] %vm349_vm6, %v345_v63  ;;  %v330_v0 = vpop.permute.xlu0 %329  ;;  %vm493_vm6 = vcmask 1046528  }
  0xa3   : > { %333 = vst.msk [vmem:[#allocation2 + $0x8] sm:$0x7] %vm332_vm7, %v330_v0  ;;  %vm497_vm7 = vcmask 1041408  }
  0xa4   : > { %348 = vst.msk [vmem:[#allocation2 + $0x8] sm:$0x7] %vm347_vm8, %v345_v63  ;;  %vm5390_vm8 = vcmask 990208  }
  0xa5   : > { %v362_v1 = vpop.permute.xlu1 %361 }
  0xa6   : > { %365 = vst.msk [vmem:[#allocation2 + $0x10] sm:$0x7] %vm364_vm9, %v362_v1  ;;  %v283_v2 = vpop.permute.xlu0 %282  ;;  %vm501_vm9 = vcmask 1044480  }
  0xa7   : > { %286 = vst.msk [vmem:[#allocation2] sm:$0x7] %vm285_vm10, %v283_v2  ;;  %vm5393_vm10 = vmmov 1  }
  0xa8   : > { %301 = vst.msk [vmem:[#allocation2] sm:$0x7] %vm300_vm11, %v298_v60  ;;  %vm4576_vm11 = vmpackc.low %vm5388_vm12, %vm5393_vm10  ;;  %vm777_vm10 = vcmask 7168  }
  0xab   : > { %v4466_v3 = vld [vmem:[#allocation2 + $0x8] sm:$0x7] }
  0xac   : > { %v403_v5 = vrot.slane %v4466_v3, 7  ;;  %v388_v7 = vrot.slane %v4466_v3, 2  ;;  %v373_v13 = vrot.slane %v4466_v3, 5  ;;  %v418_v17 = vrot.slane %v4466_v3, 4 }
  0xad   : > { %v4468_v4 = vld [vmem:[#allocation2 + $0x10] sm:$0x7]  ;;  %v433_v23 = vrot.slane %v4466_v3, 1  ;;  %v448_v27 = vrot.slane %v4466_v3, 6  ;;  %v463_v32 = vrot.slane %v4466_v3, 3 }
  0xae   : > { %v404_v6 = vrot.slane %v4468_v4, 7  ;;  %v389_v8 = vrot.slane %v4468_v4, 2  ;;  %v374_v11 = vrot.slane %v4468_v4, 5  ;;  %v419_v16 = vrot.slane %v4468_v4, 4 }
  0xaf   : > { %v4475_v12 = vld [vmem:[#allocation2] sm:$0x7]  ;;  %v434_v22 = vrot.slane %v4468_v4, 1  ;;  %v449_v26 = vrot.slane %v4468_v4, 6  ;;  %v464_v30 = vrot.slane %v4468_v4, 3 }
  0xb0   : > { %v3931_v9 = vpack.i.bf16 %v404_v6, %v403_v5  ;;  %v3926_v10 = vpack.i.bf16 %v389_v8, %v388_v7  ;;  %v3936_v14 = vpack.i.bf16 %v374_v11, %v373_v13  ;;  %v387_v15 = vrot.slane %v4475_v12, 2 }
  0xb1   : > { %v402_v18 = vrot.slane %v4475_v12, 7  ;;  %v3941_v19 = vpack.i.bf16 %v419_v16, %v418_v17  ;;  %v417_v20 = vrot.slane %v4475_v12, 4  ;;  %v372_v21 = vrot.slane %v4475_v12, 5 }
  0xb2   : > { %3932 = vrot.lane.b32.xlu1 %v3931_v9, %s4323_s28  ;;  %3927 = vrot.lane.b32.xlu0 %v3926_v10, %s4324_s29  ;;  %v432_v24 = vrot.slane %v4475_v12, 1  ;;  %v3946_v25 = vpack.i.bf16 %v434_v22, %v433_v23  ;;  %v447_v28 = vrot.slane %v4475_v12, 6  ;;  %v3951_v29 = vpack.i.bf16 %v449_v26, %v448_v27  ;;  %v238_v22 = vld [vmem:[%s5385_s2] sm:$0x7] }
  0xb3   : > { %v462_v33 = vrot.slane %v4475_v12, 3  ;;  %v3956_v34 = vpack.i.bf16 %v464_v30, %v463_v32  ;;  %v512_v7 = vsub.s32 1, %v4527_v54  ;;  %v508_v8 = vsub.s32 0, %v4527_v54 }
  0xb6   : > { %3937 = vrot.lane.b32.xlu0 %v3936_v14, %s4325_s30  ;;  %390 = vrot.lane.b32.xlu1 %v387_v15, %s4324_s29 }
  0xba   : > { %405 = vrot.lane.b32.xlu0 %v402_v18, %s4323_s28  ;;  %3942 = vrot.lane.b32.xlu1 %v3941_v19, %s4326_s5 }
  0xbe   : > { %420 = vrot.lane.b32.xlu1 %v417_v20, %s4326_s5  ;;  %375 = vrot.lane.b32.xlu0 %v372_v21, %s4325_s30 }
  0xc2   : > { %435 = vrot.lane.b32.xlu1 %v432_v24, %s4327_s6  ;;  %3947 = vrot.lane.b32.xlu0 %v3946_v25, %s4327_s6 }
  0xc6   : > { %450 = vrot.lane.b32.xlu1 %v447_v28, %s4329_s7  ;;  %3952 = vrot.lane.b32.xlu0 %v3951_v29, %s4329_s7  ;;  %v4563_v28 = vrot.slane %v238_v22, %v512_v7  ;;  %v4567_v29 = vrot.slane %v238_v22, %v508_v8 }
  0xca   : > { %465 = vrot.lane.b32.xlu1 %v462_v33, %s4330_s9  ;;  %3957 = vrot.lane.b32.xlu0 %v3956_v34, %s4330_s9 }
 0x124   : > { %v4509_v35 = vpop.permute.xlu1 %3932  ;;  %v3928_v36 = vpop.permute.xlu0 %3927 }
 0x125   : > { %v3935_v44 = vunpack.i.h.bf16 %v4509_v35  ;;  %v3934_v45 = vunpack.i.l.bf16 %v4509_v35  ;;  %v4519_v46 = vunpack.i.h.bf16 %v3928_v36  ;;  %v3929_v47 = vunpack.i.l.bf16 %v3928_v36 }
 0x127   : > { %v398_v56 = vsel %vm396_vm14, %v3929_v47, %v4519_v46  ;;  %v413_v57 = vsel %vm411_vm15, %v3934_v45, %v3935_v44  ;;  %v488_v43 = vsel %vm5388_vm12, %v4519_v46, %v3935_v44 }
 0x128   : > { %v391_v37 = vpop.permute.xlu1 %390  ;;  %v4511_v38 = vpop.permute.xlu0 %3937  ;;  %v487_v6 = vsel %vm5388_vm12, %v398_v56, %v413_v57 }
 0x129   : > { %v3940_v41 = vunpack.i.h.bf16 %v4511_v38  ;;  %v3939_v42 = vunpack.i.l.bf16 %v4511_v38  ;;  %v397_v58 = vsel %vm396_vm14, %v391_v37, %v3929_v47  ;;  %v518_v38 = vld [vmem:[%s5384_s1] sm:$0xf] }
 0x12b   : > { %v383_v53 = vsel %vm381_vm13, %v3939_v42, %v3940_v41 }
 0x12c   : > { %v4513_v39 = vpop.permute.xlu1 %3942  ;;  %v406_v40 = vpop.permute.xlu0 %405  ;;  %v479_v2 = vsel %vm477_vm2, %v4466_v3, %v383_v53  ;;  %v4334_v53 = vmov 0  }
 0x12d   : > { %v3945_v48 = vunpack.i.h.bf16 %v4513_v39  ;;  %v3944_v49 = vunpack.i.l.bf16 %v4513_v39  ;;  %v412_v55 = vsel %vm411_vm15, %v406_v40, %v3934_v45  ;;  %v483_v3 = vsel %vm481_vm3, %v479_v2, %v398_v56  ;;  %v3104_v40 = vld [vmem:[%s5386_s3 + $0xa8] sm:$0xff] }
 0x12e   : > { %v486_v5 = vsel %vm5388_vm12, %v397_v58, %v412_v55  ;;  %vm5389_vm12 = vcmask 203776   ;;  %v4332_v39 = vmov 0.0|0.0  }
 0x12f   : > { %v428_v62 = vsel %vm5394_vm0, %v3944_v49, %v3945_v48 }
 0x130   : > { %v421_v50 = vpop.permute.xlu1 %420  ;;  %v376_v51 = vpop.permute.xlu0 %375  ;;  %v491_v11 = vsel %vm489_vm1, %v487_v6, %v428_v62 }
 0x131   : > { %v382_v52 = vsel %vm381_vm13, %v376_v51, %v3939_v42  ;;  %v427_v59 = vsel %vm5394_vm0, %v421_v50, %v3944_v49  ;;  %v480_v49 = vsel %vm477_vm2, %v4468_v4, %v3940_v41  ;;  %v492_v50 = vsel %vm489_vm1, %v488_v43, %v3945_v48 }
 0x132   : > { %v478_v63 = vsel %vm477_vm2, %v4475_v12, %v382_v52  ;;  %v490_v9 = vsel %vm489_vm1, %v486_v5, %v427_v59  ;;  %v516_v51 = vsub.s32 2, %v4527_v54  ;;  %v484_v4 = vsel %vm481_vm3, %v480_v49, %v4519_v46 }
 0x133   : > { %v482_v16 = vsel %vm481_vm3, %v478_v63, %v397_v58  ;;  %vm239_vm3 = vcmp.gt.f32.partialorder %v238_v22, 0.5 }
 0x134   : > { %v436_v60 = vpop.permute.xlu1 %435  ;;  %v3948_v61 = vpop.permute.xlu0 %3947  ;;  %v4607_v48 = vrot.slane %v238_v22, %v516_v51  ;;  %v673_v55 = vsel %vm239_vm3, 1, %v4334_v53 }
 0x135   : > { %v3950_v0 = vunpack.i.h.bf16 %v3948_v61  ;;  %v3949_v1 = vunpack.i.l.bf16 %v3948_v61  ;;  %v4623_v56 = vrot.slane %v673_v55, %v508_v8  ;;  %v4627_v57 = vrot.slane %v673_v55, %v512_v7 }
 0x137   : > { %v443_v10 = vsel %vm5392_vm5, %v3949_v1, %v3950_v0  ;;  %v442_v12 = vsel %vm5392_vm5, %v436_v60, %v3949_v1  ;;  %v496_v35 = vsel %vm493_vm6, %v492_v50, %v3950_v0  ;;  %vm710_vm5 = vcmask 478208  }
 0x138   : > { %v451_v13 = vpop.permute.xlu1 %450  ;;  %v3953_v14 = vpop.permute.xlu0 %3952  ;;  %v495_v15 = vsel %vm493_vm6, %v491_v11, %v443_v10  ;;  %v494_v17 = vsel %vm493_vm6, %v490_v9, %v442_v12  ;;  %v3675_v44 = vpack.c.bf16 %v496_v35, %v484_v4  ;;  %vm4333_vm6 = vmmov 0  }
 0x139   : > { %v3955_v18 = vunpack.i.h.bf16 %v3953_v14  ;;  %v3954_v19 = vunpack.i.l.bf16 %v3953_v14  ;;  %v3664_v20 = vpack.c.bf16 %v495_v15, %v483_v3  ;;  %v3666_v21 = vpack.c.bf16 %v494_v17, %v482_v16 }
 0x13b   : > { %3665 = vmatprep.subr.bf16.mxu1 %v3664_v20  ;;  %v457_v23 = vsel %vm5391_vm4, %v451_v13, %v3954_v19  ;;  %v458_v24 = vsel %vm5391_vm4, %v3954_v19, %v3955_v18  ;;  %v500_v41 = vsel %vm497_vm7, %v3950_v0, %v3955_v18  ;;  %v4636_v0 = vrot.slane %v673_v55, %v516_v51 }
 0x13c   : > { %v3958_v25 = vpop.permute.xlu0 %3957  ;;  %3667 = vmatpush1.bf16.msra.mxu1 %v3666_v21  ;;  %v466_v30 = vpop.permute.xlu1 %465  ;;  %v499_v32 = vsel %vm497_vm7, %v443_v10, %v458_v24  ;;  %v498_v36 = vsel %vm497_vm7, %v442_v12, %v457_v23  ;;  %vm686_vm7 = vcmp.eq.s32.totalorder %v4623_v56, 1  ;;  %vm701_vm4 = vcmask 23552  }
 0x13d   : > { %v3960_v26 = vunpack.i.h.bf16 %v3958_v25  ;;  %v3959_v27 = vunpack.i.l.bf16 %v3958_v25  ;;  %vm688_vm3 = vcmp.eq.s32.totalorder %v4636_v0, 1 }
 0x13f   : > { %v472_v33 = vsel %vm5390_vm8, %v466_v30, %v3959_v27  ;;  %v473_v34 = vsel %vm5390_vm8, %v3959_v27, %v3960_v26  ;;  %v504_v52 = vsel %vm501_vm9, %v500_v41, %v3960_v26  ;;  %vm707_vm8 = vcmask 1043480  }
 0x140   : > { %v503_v37 = vsel %vm501_vm9, %v499_v32, %v473_v34  ;;  %v502_v42 = vsel %vm501_vm9, %v498_v36, %v472_v33  ;;  %v3678_v46 = vpack.c.bf16 %v4607_v48, %v504_v52 }
 0x141   : > { %v3668_v45 = vpack.c.bf16 %v4563_v28, %v503_v37  ;;  %v3671_v47 = vpack.c.bf16 %v4567_v29, %v502_v42 }
 0x143   : > { %3670 = vmatprep.subr.msk.bf16.mxu1 %vm4576_vm11, %v3668_v45 }
 0x144   : > { %3673 = vmatpush1.bf16.msk.msra.mxu1 %vm4576_vm11, %v3671_v47 }
 0x145   : > { %3674 = vmatprep.subr.bf16.mxu1 %v4332_v39 }
 0x147   : > { %3355 = vmatmul.mubr.msk.f32.vlgmr.msra.gmra.mrb[0].mxu1 %vm5389_vm12, %v518_v38 }
 0x148   : > { %3676 = vmatpush3.bf16.msra.mxu1 %v3675_v44  ;;  %3532 = vmatprep.mubr.msk.f32.mxu1 %vm4333_vm6, %v4328_v31 }
 0x149   : > { %3677 = vmatprep.subr.bf16.mxu1 %v4332_v39 }
 0x14c   : > { %3680 = vmatpush3.bf16.msk.msra.mxu1 %vm4576_vm11, %v3678_v46 }
 0x14d   : > { %3685 = vmatprep.subr.bf16.mxu1 %v4332_v39 }
 0x14f   : > { %3533 = vmatmul.mubr.msk.f32.vlgmr.msra.gmra.mrb[2].mxu1 %vm5389_vm12, %v518_v38  ;;  %vm687_vm12 = vcmp.eq.s32.totalorder %v4627_v57, 1 }
 0x150   : > { %3541 = vmatprep.mubr.msk.f32.mxu1 %vm4333_vm6, %v4328_v31 }
 0x21a   : > { %v595_v58 = vpop.f32.mrb[0].mxu1 }
 0x21b   : > { %v670_v59 = vmax.f32 %v595_v58, 0.0  ;;  %v597_v60 = vpop.f32.mrb[1].mxu1 }
 0x21c   : > { %v671_v61 = vmax.f32 %v597_v60, 0.0 }
 0x21d   : > { %v689_v62 = vsel %vm686_vm7, %v670_v59, 0.0 }
 0x21e   : > { %695 = vrot.lane.b32.xlu0 %v689_v62, %s4318_s14  ;;  %v690_v63 = vsel %vm687_vm12, %v671_v61, 0.0 }
 0x21f   : > { %697 = vrot.lane.b32.xlu1 %v690_v63, %s4318_s14 }
 0x222   : > { %v666_v54 = vpop.f32.mrb[2].mxu1 }
 0x223   : > { %v672_v1 = vmax.f32 %v666_v54, 0.0  ;;  %v3534_v2 = vpop.f32.mrb[3].mxu1 }
 0x225   : > { %v691_v5 = vsel %vm688_vm3, %v672_v1, 0.0 }
 0x226   : > { %699 = vrot.lane.b32.xlu0 %v691_v5, %s4318_s14 }
 0x290   : > { %v696_v6 = vpop.permute.xlu0 %695 }
 0x291   : > { %708 = vst.msk [vmem:[#allocation3] sm:$0xf] %vm707_vm8, %v696_v6  ;;  %v698_v7 = vpop.permute.xlu1 %697 }
 0x292   : > { %v702_v8 = vsel %vm701_vm4, %v696_v6, %v698_v7 }
 0x293   : > { %709 = vst [vmem:[#allocation3 + $0x8] sm:$0xf] %v702_v8 }
 0x298   : > { %v700_v9 = vpop.permute.xlu0 %699  ;;  %v712_v10 = vld [vmem:[#allocation3] sm:$0xf] }
 0x299   : > { %v703_v11 = vsel %vm701_vm4, %v698_v7, %v700_v9  ;;  %732 = vrot.lane.b32.xlu1 %v712_v10, %s4324_s29  ;;  %v718_v12 = vrot.slane %v712_v10, 4 }
 0x29a   : > { %711 = vst.msk [vmem:[#allocation3 + $0x10] sm:$0xf] %vm710_vm5, %v703_v11  ;;  %v713_v13 = vld [vmem:[#allocation3 + $0x8] sm:$0xf] }
 0x29b   : > { %721 = vrot.lane.b32.xlu0 %v718_v12, %s4325_s30  ;;  %v719_v15 = vrot.slane %v713_v13, 4 }
 0x29d   : > { %756 = vrot.lane.b32.xlu1 %v713_v13, %s4326_s5 }
 0x29f   : > { %743 = vrot.lane.b32.xlu0 %v718_v12, %s4323_s28 }
 0x2a1   : > { %v714_v14 = vld [vmem:[#allocation3 + $0x10] sm:$0xf] }
 0x2a2   : > { %v3961_v3 = vpack.i.bf16 %v714_v14, %v713_v13  ;;  %v720_v16 = vrot.slane %v714_v14, 4 }
 0x2a4   : > { %3962 = vrot.lane.b32.xlu0 %v3961_v3, %s4324_s29  ;;  %v3966_v17 = vpack.i.bf16 %v720_v16, %v719_v15 }
 0x2a6   : > { %3967 = vrot.lane.b32.xlu1 %v3966_v17, %s4325_s30 }
 0x2a8   : > { %758 = vrot.lane.b32.xlu0 %v714_v14, %s4326_s5 }
 0x2aa   : > { %3972 = vrot.lane.b32.xlu1 %v3966_v17, %s4323_s28 }
 0x2ac   : > { %773 = vrot.lane.b32.xlu0 %v4563_v28, %s4335_s20 }
 0x2ae   : > { %771 = vrot.lane.b32.xlu1 %v4567_v29, %s4335_s20 }
 0x2b0   : > { %754 = vrot.lane.b32.xlu0 %v712_v10, %s4326_s5 }
 0x2b2   : > { %775 = vrot.lane.b32.xlu1 %v4607_v48, %s4335_s20 }
 0x30b   : > { %v733_v19 = vpop.permute.xlu1 %732 }
 0x30d   : > { %v722_v18 = vpop.permute.xlu0 %721 }
 0x30f   : > { %v757_v21 = vpop.permute.xlu1 %756 }
 0x311   : > { %v744_v20 = vpop.permute.xlu0 %743 }
 0x316   : > { %v3963_v22 = vpop.permute.xlu0 %3962 }
 0x317   : > { %v3965_v26 = vunpack.i.h.bf16 %v3963_v22  ;;  %v3964_v27 = vunpack.i.l.bf16 %v3963_v22 }
 0x318   : > { %v3968_v23 = vpop.permute.xlu1 %3967 }
 0x319   : > { %v3970_v24 = vunpack.i.h.bf16 %v3968_v23  ;;  %v3969_v25 = vunpack.i.l.bf16 %v3968_v23  ;;  %v739_v49 = vsel %vm396_vm14, %v3964_v27, %v3965_v26  ;;  %v738_v35 = vsel %vm396_vm14, %v733_v19, %v3964_v27 }
 0x31a   : > { %v759_v30 = vpop.permute.xlu0 %758 }
 0x31b   : > { %v728_v32 = vsel %vm381_vm13, %v3969_v25, %v3970_v24  ;;  %v767_v33 = vsel %vm489_vm1, %v714_v14, %v3970_v24  ;;  %v727_v45 = vsel %vm381_vm13, %v722_v18, %v3969_v25  ;;  %v761_v60 = vsel %vm5394_vm0, %v757_v21, %v759_v30  ;;  %v3358_v24 = vld [vmem:[%s5384_s1 + $0x8] sm:$0xf] }
 0x31c   : > { %v3973_v34 = vpop.permute.xlu1 %3972  ;;  %v766_v36 = vsel %vm489_vm1, %v713_v13, %v728_v32  ;;  %v765_v44 = vsel %vm489_vm1, %v712_v10, %v727_v45 }
 0x31d   : > { %v3975_v37 = vunpack.i.h.bf16 %v3973_v34  ;;  %v3974_v42 = vunpack.i.l.bf16 %v3973_v34  ;;  %v3976_v43 = vpack.i.bf16 %v767_v33, %v766_v36 }
 0x31e   : > { %v774_v47 = vpop.permute.xlu0 %773 }
 0x31f   : > { %3977 = vrot.lane.b32.xlu1 %v3976_v43, %s4325_s30  ;;  %v750_v50 = vsel %vm411_vm15, %v3974_v42, %v3975_v37  ;;  %v770_v51 = vsel %vm489_vm1, %v3965_v26, %v3975_v37  ;;  %v749_v38 = vsel %vm411_vm15, %v744_v20, %v3974_v42  ;;  %v3991_v43 = vpack.i.bf16 %v4563_v28, %v4567_v29 }
 0x320   : > { %v4669_v4 = vpop.permute.xlu1 %771  ;;  %v769_v41 = vsel %vm489_vm1, %v739_v49, %v750_v50  ;;  %v768_v52 = vsel %vm489_vm1, %v738_v35, %v749_v38 }
 0x321   : > { %v3986_v46 = vpack.i.bf16 %v770_v51, %v769_v41  ;;  %v3981_v53 = vpack.i.bf16 %v768_v52, %v765_v44  ;;  %v4677_v55 = vsel %vm777_vm10, %v4669_v4, %v774_v47 }
 0x322   : > { %v755_v58 = vpop.permute.xlu0 %754  ;;  %v784_v62 = vsel %vm489_vm1, %v761_v60, %v4677_v55 }
 0x323   : > { %3987 = vrot.lane.b32.xlu0 %v3986_v46, %s4325_s30  ;;  %3982 = vrot.lane.b32.xlu1 %v3981_v53, %s4325_s30  ;;  %v760_v54 = vsel %vm5394_vm0, %v755_v58, %v757_v21 }
 0x324   : > { %v776_v59 = vpop.permute.xlu1 %775  ;;  %v783_v1 = vsel %vm489_vm1, %v760_v54, %v4669_v4 }
 0x325   : > { %v4680_v61 = vsel %vm777_vm10, %v774_v47, %v776_v59  ;;  %vm827_vm10 = vcmask 171008  }
 0x326   : > { %v785_v63 = vsel %vm489_vm1, %v759_v30, %v4680_v61 }
 0x327   : > { %811 = vrot.lane.b32.xlu0 %v784_v62, %s4325_s30  ;;  %813 = vrot.lane.b32.xlu1 %v785_v63, %s4325_s30 }
 0x32b   : > { %809 = vrot.lane.b32.xlu0 %v783_v1, %s4325_s30 }
 0x391   : > { %v3978_v2 = vpop.permute.xlu1 %3977 }
 0x392   : > { %v3980_v5 = vunpack.i.h.bf16 %v3978_v2  ;;  %v3979_v6 = vunpack.i.l.bf16 %v3978_v2 }
 0x394   : > { %v816_v13 = vsel %vm381_vm13, %v3979_v6, %v3980_v5 }
 0x395   : > { %v3988_v7 = vpop.permute.xlu0 %3987  ;;  %v3983_v8 = vpop.permute.xlu1 %3982 }
 0x396   : > { %v3990_v9 = vunpack.i.h.bf16 %v3988_v7  ;;  %v3989_v10 = vunpack.i.l.bf16 %v3988_v7  ;;  %v3985_v11 = vunpack.i.h.bf16 %v3983_v8  ;;  %v3984_v12 = vunpack.i.l.bf16 %v3983_v8 }
 0x398   : > { %v3686_v14 = vpack.c.bf16 %v3990_v9, %v3980_v5  ;;  %v818_v3 = vsel %vm381_vm13, %v3989_v10, %v3990_v9  ;;  %v815_v15 = vsel %vm381_vm13, %v3984_v12, %v3979_v6  ;;  %v817_v16 = vsel %vm381_vm13, %v3985_v11, %v3989_v10 }
 0x399   : > { %v812_v17 = vpop.permute.xlu0 %811  ;;  %v814_v18 = vpop.permute.xlu1 %813  ;;  %v3681_v19 = vpack.c.bf16 %v818_v3, %v816_v13  ;;  %v3683_v20 = vpack.c.bf16 %v817_v16, %v815_v15 }
 0x39a   : > { %3687 = vmatpush3.bf16.msra.mxu1 %v3686_v14  ;;  %v820_v21 = vsel %vm381_vm13, %v812_v17, %v814_v18 }
 0x39b   : > { %3682 = vmatprep.subr.bf16.mxu0 %v3681_v19  ;;  %3539 = vmatprep.subr.mxu1 %v4328_v31 }
 0x39c   : > { %3684 = vmatpush1.bf16.msra.mxu0 %v3683_v20 }
 0x39d   : > { %v810_v22 = vpop.permute.xlu0 %809  ;;  %3359 = vmatprep.subr.msk.mxu0 %vm501_vm9, %v820_v21 }
 0x39e   : > { %v819_v23 = vsel %vm381_vm13, %v810_v22, %v812_v17  ;;  %3540 = vmatpush3.msk.msra.mxu1 %vm501_vm9, %v814_v18 }
 0x39f   : > { %3542 = vmatmul.mubr.msk.f32.vlgmr.msra.gmra.mrb[4].mxu1 %vm827_vm10, %v3358_v24  ;;  %3694 = vmatprep.subr.bf16.mxu1 %v4332_v39 }
 0x3a0   : > { %3360 = vmatpush1.msk.msra.mxu0 %vm501_vm9, %v819_v23  ;;  %3548 = vmatprep.mubr.msk.f32.mxu1 %vm4333_vm6, %v4328_v31 }
 0x3a1   : > { %3361 = vmatmul.mubr.msk.f32.vlgmr.msra.gmra.mrb[0].mxu0 %vm827_vm10, %v3358_v24  ;;  %vm1041_vm10 = vcmask 15360  }
 0x3a2   : > { %1151 = vmatprep.mubr.f32.mxu0 %v4328_v31 }
 0x472   : > { %v974_v25 = vpop.f32.mrb[4].mxu1 }
 0x473   : > { %v3543_v26 = vpop.f32.mrb[5].mxu1  ;;  %v980_v33 = vmax.f32 %v974_v25, 0.0 }
 0x474   : > { %v903_v27 = vpop.f32.mrb[0].mxu0  ;;  %v1232_v26 = vld [vmem:[#allocation2 + $0x8] sm:$0x7] }
 0x475   : > { %v978_v30 = vmax.f32 %v903_v27, 0.0  ;;  %v905_v32 = vpop.f32.mrb[1].mxu0  ;;  %v983_v42 = vsel %vm688_vm3, %v980_v33, 0.0 }
 0x476   : > { %v979_v34 = vmax.f32 %v905_v32, 0.0 }
 0x477   : > { %v981_v36 = vsel %vm686_vm7, %v978_v30, 0.0 }
 0x478   : > { %987 = vrot.lane.b32.xlu1 %v981_v36, %s4318_s14  ;;  %v982_v37 = vsel %vm687_vm12, %v979_v34, 0.0  ;;  %v1231_v34 = vld [vmem:[#allocation2] sm:$0x7] }
 0x479   : > { %989 = vrot.lane.b32.xlu0 %v982_v37, %s4318_s14  ;;  %v1233_v37 = vld [vmem:[#allocation2 + $0x10] sm:$0x7] }
 0x47c   : > { %991 = vrot.lane.b32.xlu1 %v983_v42, %s4318_s14 }
 0x47d   : > { %3992 = vrot.lane.b32.xlu0 %v3991_v43, %s4336_s27 }
 0x480   : > { %1039 = vrot.lane.b32.xlu1 %v4607_v48, %s4336_s27  ;;  %s3269_s27 = scalar_lea.sflag [#allocation7], %s4420_s8 }
 0x4ea   : > { %v988_v45 = vpop.permute.xlu1 %987 }
 0x4eb   : > { %998 = vst.msk [vmem:[#allocation4] sm:$0xf] %vm707_vm8, %v988_v45  ;;  %v990_v47 = vpop.permute.xlu0 %989 }
 0x4ec   : > { %v993_v49 = vsel %vm701_vm4, %v988_v45, %v990_v47 }
 0x4ed   : > { %999 = vst [vmem:[#allocation4 + $0x8] sm:$0xf] %v993_v49 }
 0x4ee   : > { %v992_v50 = vpop.permute.xlu1 %991 }
 0x4ef   : > { %v994_v51 = vsel %vm701_vm4, %v990_v47, %v992_v50  ;;  %v3993_v59 = vpop.permute.xlu0 %3992 }
 0x4f0   : > { %1000 = vst.msk [vmem:[#allocation4 + $0x10] sm:$0xf] %vm710_vm5, %v994_v51  ;;  %v3995_v62 = vunpack.i.h.bf16 %v3993_v59  ;;  %v4735_v63 = vunpack.i.l.bf16 %v3993_v59 }
 0x4f2   : > { %v1001_v35 = vld [vmem:[#allocation4] sm:$0xf]  ;;  %v1040_v60 = vpop.permute.xlu1 %1039  ;;  %v4738_v6 = vsel %vm1041_vm10, %v4735_v63, %v3995_v62 }
 0x4f3   : > { %v1007_v38 = vrot.slane %v1001_v35, 4  ;;  %v4740_v7 = vsel %vm1041_vm10, %v3995_v62, %v1040_v60  ;;  %vm5400_vm10 = vmmov 1   ;;  %v3364_v60 = vld [vmem:[%s5384_s1 + $0x10] sm:$0xf] }
 0x4f4   : > { %v1002_v41 = vld [vmem:[#allocation4 + $0x8] sm:$0xf]  ;;  %vm4778_vm0 = vmpackc.low %vm501_vm9, %vm5400_vm10  ;;  %vm1261_vm10 = vcmask 31744  }
 0x4f5   : > { %1010 = vrot.lane.b32.xlu0 %v1007_v38, %s4325_s30  ;;  %v1008_v46 = vrot.slane %v1002_v41, 4 }
 0x4f7   : > { %v1003_v44 = vld [vmem:[#allocation4 + $0x10] sm:$0xf] }
 0x4f8   : > { %v3996_v52 = vpack.i.bf16 %v1003_v44, %v1002_v41  ;;  %v1009_v53 = vrot.slane %v1003_v44, 4 }
 0x4fa   : > { %3997 = vrot.lane.b32.xlu1 %v3996_v52, %s4324_s29  ;;  %v4001_v58 = vpack.i.bf16 %v1009_v53, %v1008_v46 }
 0x4fc   : > { %4002 = vrot.lane.b32.xlu0 %v4001_v58, %s4325_s30 }
 0x4fe   : > { %1021 = vrot.lane.b32.xlu1 %v1001_v35, %s4324_s29 }
 0x500   : > { %1234 = vrot.lane.b32.xlu0 %v4567_v29, %s4318_s14 }
 0x502   : > { %1236 = vrot.lane.b32.xlu1 %v4563_v28, %s4318_s14 }
 0x504   : > { %1238 = vrot.lane.b32.xlu0 %v4607_v48, %s4318_s14 }
 0x567   : > { %v1011_v54 = vpop.permute.xlu0 %1010 }
 0x56c   : > { %v3998_v1 = vpop.permute.xlu1 %3997 }
 0x56d   : > { %v4000_v2 = vunpack.i.h.bf16 %v3998_v1  ;;  %v3999_v5 = vunpack.i.l.bf16 %v3998_v1 }
 0x56e   : > { %v4003_v8 = vpop.permute.xlu0 %4002 }
 0x56f   : > { %v4005_v9 = vunpack.i.h.bf16 %v4003_v8  ;;  %v4004_v10 = vunpack.i.l.bf16 %v4003_v8  ;;  %v1028_v11 = vsel %vm396_vm14, %v3999_v5, %v4000_v2  ;;  %v1049_v12 = vsel %vm489_vm1, %v4000_v2, %v4740_v7 }
 0x570   : > { %v1022_v13 = vpop.permute.xlu1 %1021  ;;  %v1048_v14 = vsel %vm489_vm1, %v1028_v11, %v4738_v6 }
 0x571   : > { %v1027_v3 = vsel %vm396_vm14, %v1022_v13, %v3999_v5  ;;  %v4006_v15 = vpack.i.bf16 %v1049_v12, %v1048_v14  ;;  %v1017_v16 = vsel %vm381_vm13, %v4004_v10, %v4005_v9  ;;  %v1034_v17 = vsel %vm489_vm1, %v1003_v44, %v4005_v9  ;;  %v3370_v9 = vld [vmem:[%s5384_s1 + $0x18] sm:$0xf] }
 0x572   : > { %v4750_v18 = vpop.permute.xlu0 %1234  ;;  %v1033_v19 = vsel %vm489_vm1, %v1002_v41, %v1017_v16  ;;  %v1016_v20 = vsel %vm381_vm13, %v1011_v54, %v4004_v10  ;;  %v1047_v22 = vsel %vm489_vm1, %v1027_v3, %v4735_v63 }
 0x573   : > { %4007 = vrot.lane.b32.xlu0 %v4006_v15, %s4324_s29  ;;  %v4011_v21 = vpack.i.bf16 %v1034_v17, %v1033_v19  ;;  %v1032_v24 = vsel %vm489_vm1, %v1001_v35, %v1016_v20  ;;  %v1245_v36 = vsel %vm477_vm2, %v1231_v34, %v4750_v18 }
 0x574   : > { %v1237_v23 = vpop.permute.xlu1 %1236  ;;  %v4016_v32 = vpack.i.bf16 %v1047_v22, %v1032_v24 }
 0x575   : > { %v4760_v25 = vsel %vm701_vm4, %v4750_v18, %v1237_v23  ;;  %4012 = vrot.lane.b32.xlu1 %v4011_v21, %s4324_s29 }
 0x576   : > { %v1239_v27 = vpop.permute.xlu0 %1238  ;;  %v1246_v30 = vsel %vm477_vm2, %v1232_v26, %v4760_v25 }
 0x577   : > { %1255 = vrot.lane.b32.xlu0 %v1246_v30, %s4323_s28  ;;  %v4767_v33 = vsel %vm701_vm4, %v1237_v23, %v1239_v27 }
 0x578   : > { %v1247_v42 = vsel %vm477_vm2, %v1233_v37, %v4767_v33  ;;  %vm1077_vm2 = vcmask 105472  }
 0x579   : > { %4017 = vrot.lane.b32.xlu1 %v4016_v32, %s4324_s29 }
 0x57b   : > { %1253 = vrot.lane.b32.xlu0 %v1245_v36, %s4323_s28 }
 0x57d   : > { %1257 = vrot.lane.b32.xlu1 %v1247_v42, %s4323_s28 }
 0x5e5   : > { %v4008_v43 = vpop.permute.xlu0 %4007 }
 0x5e6   : > { %v4010_v45 = vunpack.i.h.bf16 %v4008_v43  ;;  %v4009_v47 = vunpack.i.l.bf16 %v4008_v43 }
 0x5e7   : > { %v4013_v49 = vpop.permute.xlu1 %4012 }
 0x5e8   : > { %v4015_v50 = vunpack.i.h.bf16 %v4013_v49  ;;  %v4014_v51 = vunpack.i.l.bf16 %v4013_v49  ;;  %v1073_v38 = vsel %vm396_vm14, %v4009_v47, %v4010_v45 }
 0x5e9   : > { %v1256_v52 = vpop.permute.xlu0 %1255 }
 0x5ea   : > { %v1071_v41 = vsel %vm396_vm14, %v4014_v51, %v4015_v50  ;;  %v3695_v44 = vpack.c.bf16 %v4010_v45, %v4015_v50 }
 0x5eb   : > { %v4018_v46 = vpop.permute.xlu1 %4017  ;;  %v3688_v53 = vpack.c.bf16 %v1073_v38, %v1071_v41 }
 0x5ec   : > { %v4020_v58 = vunpack.i.h.bf16 %v4018_v46  ;;  %v4019_v59 = vunpack.i.l.bf16 %v4018_v46  ;;  %3697 = vmatpush3.bf16.msk.msra.mxu1 %vm4778_vm0, %v3695_v44 }
 0x5ed   : > { %3690 = vmatprep.subr.msk.bf16.mxu0 %vm4778_vm0, %v3688_v53  ;;  %3551 = vmatprep.subr.mxu1 %v4328_v31  ;;  %v1254_v8 = vpop.permute.xlu0 %1253 }
 0x5ee   : > { %v1072_v62 = vsel %vm396_vm14, %v4020_v58, %v4009_v47  ;;  %v1070_v54 = vsel %vm396_vm14, %v4019_v59, %v4014_v51  ;;  %v1259_v10 = vsel %vm411_vm15, %v1254_v8, %v1256_v52 }
 0x5ef   : > { %v3691_v1 = vpack.c.bf16 %v1072_v62, %v1070_v54  ;;  %v1258_v2 = vpop.permute.xlu1 %1257  ;;  %3549 = vmatmul.mubr.msk.f32.vlgmr.msra.gmra.mrb[6].mxu1 %vm1077_vm2, %v3364_v60 }
 0x5f0   : > { %v1260_v5 = vsel %vm411_vm15, %v1256_v52, %v1258_v2  ;;  %3552 = vmatpush3.msk.msra.mxu1 %vm489_vm1, %v1258_v2  ;;  %3553 = vmatprep.mubr.msk.f32.mxu1 %vm4333_vm6, %v4328_v31 }
 0x5f1   : > { %3693 = vmatpush1.bf16.msk.msra.mxu0 %vm4778_vm0, %v3691_v1  ;;  %3706 = vmatprep.subr.bf16.mxu1 %v4332_v39  ;;  %vm5403_vm0 = vcmask 1006592  }
 0x5f2   : > { %3371 = vmatprep.subr.msk.mxu0 %vm489_vm1, %v1260_v5 }
 0x5f3   : > { %3554 = vmatmul.mubr.msk.f32.vlgmr.msra.gmra.mrb[8].mxu1 %vm1261_vm10, %v3370_v9 }
 0x5f4   : > { %3367 = vmatmul.mubr.msk.f32.vlgmr.msra.gmra.mrb[2].mxu0 %vm1077_vm2, %v3364_v60  ;;  %3566 = vmatprep.mubr.msk.f32.mxu1 %vm4333_vm6, %v4328_v31  ;;  %vm5406_vm2 = vmmov %vm5403_vm0 }
 0x5f5   : > { %3372 = vmatpush1.msk.msra.mxu0 %vm489_vm1, %v1259_v10  ;;  %1335 = vmatprep.mubr.f32.mxu0 %v4328_v31 }
 0x5f8   : > { %3373 = vmatmul.mubr.msk.f32.vlgmr.msra.gmra.mrb[4].mxu0 %vm1261_vm10, %v3370_v9  ;;  %vm5407_vm10 = vcmask 990208  }
 0x5f9   : > { %1603 = vmatprep.mubr.f32.mxu0 %v4328_v31 }
 0x6c2   : > { %v1224_v11 = vpop.f32.mrb[6].mxu1 }
 0x6c3   : > { %v1230_v12 = vmax.f32 %v1224_v11, 0.0  ;;  %v3550_v13 = vpop.f32.mrb[7].mxu1 }
 0x6c6   : > { %v1408_v14 = vpop.f32.mrb[8].mxu1 }
 0x6c7   : > { %v1153_v3 = vpop.f32.mrb[2].mxu0  ;;  %v1414_v15 = vadd.f32 %v1408_v14, %v1230_v12  ;;  %v3555_v16 = vpop.f32.mrb[9].mxu1 }
 0x6c8   : > { %v1155_v17 = vpop.f32.mrb[3].mxu0  ;;  %v1228_v19 = vmax.f32 %v1153_v3, 0.0 }
 0x6c9   : > { %v1229_v20 = vmax.f32 %v1155_v17, 0.0  ;;  %v1417_v30 = vsel %vm688_vm3, %v1414_v15, 0.0 }
 0x6cb   : > { %v1337_v21 = vpop.f32.mrb[4].mxu0 }
 0x6cc   : > { %v1412_v22 = vadd.f32 %v1337_v21, %v1228_v19  ;;  %v1339_v23 = vpop.f32.mrb[5].mxu0 }
 0x6cd   : > { %v1413_v24 = vadd.f32 %v1339_v23, %v1229_v20 }
 0x6ce   : > { %v1415_v26 = vsel %vm686_vm7, %v1412_v22, 0.0 }
 0x6cf   : > { %1421 = vrot.lane.b32.xlu1 %v1415_v26, %s4318_s14  ;;  %v1416_v27 = vsel %vm687_vm12, %v1413_v24, 0.0 }
 0x6d0   : > { %1423 = vrot.lane.b32.xlu0 %v1416_v27, %s4318_s14 }
 0x6d3   : > { %1425 = vrot.lane.b32.xlu1 %v1417_v30, %s4318_s14 }
 0x741   : > { %v1422_v32 = vpop.permute.xlu1 %1421 }
 0x742   : > { %1432 = vst.msk [vmem:[#allocation2] sm:$0xf] %vm707_vm8, %v1422_v32  ;;  %v1424_v34 = vpop.permute.xlu0 %1423  ;;  %vm5405_vm8 = vcmask 998400  }
 0x743   : > { %v1427_v36 = vsel %vm701_vm4, %v1422_v32, %v1424_v34 }
 0x744   : > { %1433 = vst [vmem:[#allocation2 + $0x8] sm:$0xf] %v1427_v36 }
 0x745   : > { %v1426_v37 = vpop.permute.xlu1 %1425 }
 0x746   : > { %v1428_v42 = vsel %vm701_vm4, %v1424_v34, %v1426_v37 }
 0x747   : > { %1434 = vst.msk [vmem:[#allocation2 + $0x10] sm:$0xf] %vm710_vm5, %v1428_v42  ;;  %vm5404_vm5 = vcmask 1014784  }
 0x749   : > { %v1435_v43 = vld [vmem:[#allocation2] sm:$0xf] }
 0x74a   : > { %1455 = vrot.lane.b32.xlu0 %v1435_v43, %s4324_s29  ;;  %v1441_v50 = vrot.slane %v1435_v43, 4 }
 0x74b   : > { %v1436_v45 = vld [vmem:[#allocation2 + $0x8] sm:$0xf] }
 0x74c   : > { %v1442_v35 = vrot.slane %v1436_v45, 4 }
 0x74e   : > { %v1437_v47 = vld [vmem:[#allocation2 + $0x10] sm:$0xf] }
 0x74f   : > { %v4026_v49 = vpack.i.bf16 %v1437_v47, %v1436_v45  ;;  %v1443_v51 = vrot.slane %v1437_v47, 4 }
 0x751   : > { %4027 = vrot.lane.b32.xlu0 %v4026_v49, %s4326_s5  ;;  %4022 = vrot.lane.b32.xlu1 %v4026_v49, %s4324_s29  ;;  %v4036_v38 = vpack.i.bf16 %v1443_v51, %v1442_v35 }
 0x755   : > { %4032 = vrot.lane.b32.xlu0 %v4026_v49, %s4329_s7  ;;  %1444 = vrot.lane.b32.xlu1 %v1441_v50, %s4325_s30 }
 0x759   : > { %1466 = vrot.lane.b32.xlu1 %v1441_v50, %s4323_s28  ;;  %4037 = vrot.lane.b32.xlu0 %v4036_v38, %s4325_s30 }
 0x75d   : > { %1488 = vrot.lane.b32.xlu1 %v1441_v50, %s4327_s6  ;;  %4042 = vrot.lane.b32.xlu0 %v4036_v38, %s4323_s28 }
 0x761   : > { %4047 = vrot.lane.b32.xlu1 %v4036_v38, %s4327_s6  ;;  %1477 = vrot.lane.b32.xlu0 %v1435_v43, %s4326_s5 }
 0x765   : > { %4052 = vrot.lane.b32.xlu1 %v4036_v38, %s4330_s9  ;;  %1499 = vrot.lane.b32.xlu0 %v1435_v43, %s4329_s7 }
 0x769   : > { %1510 = vrot.lane.b32.xlu1 %v1441_v50, %s4330_s9 }
 0x7bc   : > { %v1456_v41 = vpop.permute.xlu0 %1455 }
 0x7c3   : > { %v4028_v44 = vpop.permute.xlu0 %4027  ;;  %v4023_v52 = vpop.permute.xlu1 %4022 }
 0x7c4   : > { %v4025_v54 = vunpack.i.h.bf16 %v4023_v52  ;;  %v4024_v1 = vunpack.i.l.bf16 %v4023_v52  ;;  %v4030_v11 = vunpack.i.h.bf16 %v4028_v44  ;;  %v4029_v34 = vunpack.i.l.bf16 %v4028_v44 }
 0x7c6   : > { %v1461_v12 = vsel %vm396_vm14, %v1456_v41, %v4024_v1  ;;  %v1462_v13 = vsel %vm396_vm14, %v4024_v1, %v4025_v54  ;;  %v1484_v51 = vsel %vm5404_vm5, %v4029_v34, %v4030_v11 }
 0x7c7   : > { %v4033_v46 = vpop.permute.xlu0 %4032  ;;  %v1445_v53 = vpop.permute.xlu1 %1444 }
 0x7c8   : > { %v4035_v36 = vunpack.i.h.bf16 %v4033_v46  ;;  %v4034_v37 = vunpack.i.l.bf16 %v4033_v46 }
 0x7ca   : > { %v1506_v35 = vsel %vm5405_vm8, %v4034_v37, %v4035_v36 }
 0x7cb   : > { %v1467_v58 = vpop.permute.xlu1 %1466  ;;  %v4038_v59 = vpop.permute.xlu0 %4037 }
 0x7cc   : > { %v4040_v60 = vunpack.i.h.bf16 %v4038_v59  ;;  %v4039_v62 = vunpack.i.l.bf16 %v4038_v59 }
 0x7ce   : > { %v1451_v8 = vsel %vm381_vm13, %v4039_v62, %v4040_v60  ;;  %v1450_v14 = vsel %vm381_vm13, %v1445_v53, %v4039_v62  ;;  %v1523_v3 = vsel %vm489_vm1, %v1437_v47, %v4040_v60 }
 0x7cf   : > { %v1489_v2 = vpop.permute.xlu1 %1488  ;;  %v4043_v5 = vpop.permute.xlu0 %4042  ;;  %v1522_v22 = vsel %vm489_vm1, %v1436_v45, %v1451_v8  ;;  %v1521_v32 = vsel %vm489_vm1, %v1435_v43, %v1450_v14 }
 0x7d0   : > { %v4045_v9 = vunpack.i.h.bf16 %v4043_v5  ;;  %v4044_v10 = vunpack.i.l.bf16 %v4043_v5 }
 0x7d2   : > { %v1526_v15 = vsel %vm489_vm1, %v4025_v54, %v4045_v9  ;;  %v1472_v16 = vsel %vm411_vm15, %v1467_v58, %v4044_v10  ;;  %v1473_v17 = vsel %vm411_vm15, %v4044_v10, %v4045_v9  ;;  %v3376_v9 = vld [vmem:[%s5384_s1 + $0x20] sm:$0xff] }
 0x7d3   : > { %v3707_v19 = vpack.c.bf16 %v1526_v15, %v1523_v3  ;;  %v4048_v20 = vpop.permute.xlu1 %4047  ;;  %v1478_v21 = vpop.permute.xlu0 %1477  ;;  %v1525_v23 = vsel %vm489_vm1, %v1462_v13, %v1473_v17  ;;  %v1524_v24 = vsel %vm489_vm1, %v1461_v12, %v1472_v16 }
 0x7d4   : > { %v4050_v26 = vunpack.i.h.bf16 %v4048_v20  ;;  %v4049_v27 = vunpack.i.l.bf16 %v4048_v20  ;;  %v3698_v30 = vpack.c.bf16 %v1525_v23, %v1522_v22  ;;  %v3700_v42 = vpack.c.bf16 %v1524_v24, %v1521_v32 }
 0x7d5   : > { %3708 = vmatpush3.bf16.msra.mxu1 %v3707_v19 }
 0x7d6   : > { %3699 = vmatprep.subr.bf16.mxu0 %v3698_v30  ;;  %3709 = vmatprep.subr.bf16.mxu1 %v4332_v39  ;;  %v1495_v45 = vsel %vm5403_vm0, %v4049_v27, %v4050_v26  ;;  %v1529_v43 = vsel %vm489_vm1, %v4030_v11, %v4050_v26  ;;  %v1494_v41 = vsel %vm5406_vm2, %v1489_v2, %v4049_v27  ;;  %vm5408_vm0 = vmmov %vm5404_vm5  ;;  %vm5411_vm2 = vcmask 1040384  }
 0x7d7   : > { %v4053_v47 = vpop.permute.xlu1 %4052  ;;  %3701 = vmatpush1.bf16.msra.mxu0 %v3700_v42  ;;  %v1500_v38 = vpop.permute.xlu0 %1499  ;;  %v1528_v58 = vsel %vm489_vm1, %v1484_v51, %v1495_v45  ;;  %v1483_v60 = vsel %vm5408_vm0, %v1478_v21, %v4029_v34  ;;  %vm5409_vm5 = vmmov %vm5405_vm8 }
 0x7d8   : > { %v4055_v49 = vunpack.i.h.bf16 %v4053_v47  ;;  %v4054_v50 = vunpack.i.l.bf16 %v4053_v47  ;;  %v1505_v62 = vsel %vm5409_vm5, %v1500_v38, %v4034_v37  ;;  %vm5410_vm8 = vmmov %vm5407_vm10  ;;  %v1527_v5 = vsel %vm489_vm1, %v1483_v60, %v1494_v41 }
 0x7d9   : > { %vm5412_vm0 = vmmov %vm5411_vm2 }
 0x7da   : > { %v1532_v44 = vsel %vm489_vm1, %v4035_v36, %v4055_v49  ;;  %v1517_v52 = vsel %vm5407_vm10, %v4054_v50, %v4055_v49  ;;  %vm1535_vm10 = vcmask 269312   ;;  %vm5413_vm5 = vmmov %vm5412_vm0 }
 0x7db   : > { %v3710_v46 = vpack.c.bf16 %v1532_v44, %v1529_v43  ;;  %v1511_v53 = vpop.permute.xlu1 %1510  ;;  %v1531_v59 = vsel %vm489_vm1, %v1506_v35, %v1517_v52 }
 0x7dc   : > { %v1516_v54 = vsel %vm5410_vm8, %v1511_v53, %v4054_v50  ;;  %v3702_v1 = vpack.c.bf16 %v1531_v59, %v1528_v58  ;;  %vm1700_vm8 = vcmask 1047576  }
 0x7dd   : > { %v1530_v2 = vsel %vm489_vm1, %v1505_v62, %v1516_v54  ;;  %3711 = vmatpush3.bf16.msra.mxu1 %v3710_v46 }
 0x7de   : > { %v3704_v8 = vpack.c.bf16 %v1530_v2, %v1527_v5  ;;  %3703 = vmatprep.subr.bf16.mxu0 %v3702_v1  ;;  %3564 = vmatprep.subr.mxu1 %v4328_v31 }
 0x7e0   : > { %3705 = vmatpush1.bf16.msra.mxu0 %v3704_v8 }
 0x7e1   : > { %3377 = vmatprep.subr.msk.mxu0 %vm5411_vm2, %v4563_v28  ;;  %3565 = vmatpush3.msk.msra.mxu1 %vm5412_vm0, %v4607_v48  ;;  %vm1703_vm2 = vcmask 482304  }
 0x7e2   : > { %3567 = vmatmul.mubr.msk.f32.vlgmr.msra.gmra.mrb[10].mxu1 %vm1535_vm10, %v3376_v9  ;;  %3726 = vmatprep.subr.bf16.mxu1 %v4332_v39 }
 0x7e3   : > { %3581 = vmatprep.mubr.msk.f32.mxu1 %vm4333_vm6, %v4328_v31 }
 0x7e4   : > { %3378 = vmatpush1.msk.msra.mxu0 %vm5413_vm5, %v4567_v29  ;;  %vm5395_vm5 = vcmask 334848  }
 0x7e5   : > { %3379 = vmatmul.mubr.msk.f32.vlgmr.msra.gmra.mrb[6].mxu0 %vm1535_vm10, %v3376_v9  ;;  %vm5414_vm10 = vcmask 1014784  }
 0x7e6   : > { %1874 = vmatprep.mubr.f32.mxu0 %v4328_v31  ;;  %vm5415_vm0 = vmmov %vm5414_vm10 }
 0x8b5   : > { %v1676_v10 = vpop.f32.mrb[10].mxu1 }
 0x8b6   : > { %v3568_v11 = vpop.f32.mrb[11].mxu1  ;;  %v1682_v3 = vmax.f32 %v1676_v10, 0.0 }
 0x8b8   : > { %v1605_v12 = vpop.f32.mrb[6].mxu0  ;;  %v1685_v19 = vsel %vm688_vm3, %v1682_v3, 0.0 }
 0x8b9   : > { %v1680_v13 = vmax.f32 %v1605_v12, 0.0  ;;  %v1607_v14 = vpop.f32.mrb[7].mxu0 }
 0x8ba   : > { %v1681_v15 = vmax.f32 %v1607_v14, 0.0 }
 0x8bb   : > { %v1683_v16 = vsel %vm686_vm7, %v1680_v13, 0.0 }
 0x8bc   : > { %1689 = vrot.lane.b32.xlu0 %v1683_v16, %s4318_s14  ;;  %v1684_v17 = vsel %vm687_vm12, %v1681_v15, 0.0 }
 0x8bd   : > { %1691 = vrot.lane.b32.xlu1 %v1684_v17, %s4318_s14 }
 0x8c0   : > { %1693 = vrot.lane.b32.xlu0 %v1685_v19, %s4318_s14 }
 0x92e   : > { %v1690_v20 = vpop.permute.xlu0 %1689 }
 0x92f   : > { %1701 = vst.msk [vmem:[#allocation3] sm:$0xff] %vm1700_vm8, %v1690_v20  ;;  %v1692_v21 = vpop.permute.xlu1 %1691 }
 0x930   : > { %v1695_v26 = vsel %vm701_vm4, %v1690_v20, %v1692_v21 }
 0x932   : > { %v1694_v22 = vpop.permute.xlu0 %1693 }
 0x933   : > { %v1696_v23 = vsel %vm701_vm4, %v1692_v21, %v1694_v22 }
 0x934   : > { %1704 = vst.msk [vmem:[#allocation3 + $0x10] sm:$0xff] %vm1703_vm2, %v1696_v23 }
 0x936   : > { %v1705_v24 = vld [vmem:[#allocation3] sm:$0xff] }
 0x937   : > { %1719 = vrot.lane.b32.xlu1 %v1705_v24, %s4324_s29  ;;  %1711 = vrot.lane.b32.xlu0 %v1705_v24, %s4325_s30 }
 0x93b   : > { %v1707_v27 = vld [vmem:[#allocation3 + $0x10] sm:$0xff] }
 0x93c   : > { %v4066_v30 = vpack.i.bf16 %v1707_v27, %v1695_v26 }
 0x93e   : > { %4067 = vrot.lane.b32.xlu0 %v4066_v30, %s4323_s28  ;;  %4057 = vrot.lane.b32.xlu1 %v4066_v30, %s4325_s30 }
 0x942   : > { %1727 = vrot.lane.b32.xlu0 %v1705_v24, %s4323_s28  ;;  %4062 = vrot.lane.b32.xlu1 %v4066_v30, %s4324_s29 }
 0x946   : > { %1735 = vrot.lane.b32.xlu0 %v1705_v24, %s4326_s5  ;;  %4072 = vrot.lane.b32.xlu1 %v4066_v30, %s4326_s5 }
 0x9a9   : > { %v1720_v32 = vpop.permute.xlu1 %1719  ;;  %v1712_v34 = vpop.permute.xlu0 %1711 }
 0x9b0   : > { %v4058_v36 = vpop.permute.xlu1 %4057  ;;  %v4068_v37 = vpop.permute.xlu0 %4067 }
 0x9b1   : > { %v4060_v42 = vunpack.i.h.bf16 %v4058_v36  ;;  %v4059_v47 = vunpack.i.l.bf16 %v4058_v36  ;;  %v4070_v45 = vunpack.i.h.bf16 %v4068_v37  ;;  %v4069_v49 = vunpack.i.l.bf16 %v4068_v37 }
 0x9b3   : > { %v1718_v50 = vsel %vm381_vm13, %v4059_v47, %v4060_v42  ;;  %v1734_v41 = vsel %vm411_vm15, %v4069_v49, %v4070_v45  ;;  %v1717_v46 = vsel %vm381_vm13, %v1712_v34, %v4059_v47 }
 0x9b4   : > { %v4063_v51 = vpop.permute.xlu1 %4062  ;;  %v4076_v35 = vpack.i.bf16 %v4060_v42, %v1718_v50  ;;  %v1728_v44 = vpop.permute.xlu0 %1727 }
 0x9b5   : > { %v4065_v38 = vunpack.i.h.bf16 %v4063_v51  ;;  %v4064_v43 = vunpack.i.l.bf16 %v4063_v51  ;;  %v1733_v1 = vsel %vm411_vm15, %v1728_v44, %v4069_v49 }
 0x9b6   : > { %4077 = vrot.lane.b32.xlu1 %v4076_v35, %s4325_s30 }
 0x9b7   : > { %v4086_v52 = vpack.i.bf16 %v1734_v41, %v4065_v38  ;;  %v1726_v53 = vsel %vm396_vm14, %v4064_v43, %v4065_v38  ;;  %v1725_v54 = vsel %vm396_vm14, %v1720_v32, %v4064_v43 }
 0x9b8   : > { %v4073_v58 = vpop.permute.xlu1 %4072  ;;  %v4081_v59 = vpack.i.bf16 %v1726_v53, %v1717_v46  ;;  %v1736_v2 = vpop.permute.xlu0 %1735  ;;  %v4091_v8 = vpack.i.bf16 %v1725_v54, %v4070_v45 }
 0x9b9   : > { %v4075_v60 = vunpack.i.h.bf16 %v4073_v58  ;;  %v4074_v62 = vunpack.i.l.bf16 %v4073_v58 }
 0x9ba   : > { %4082 = vrot.lane.b32.xlu0 %v4081_v59, %s4325_s30  ;;  %4087 = vrot.lane.b32.xlu1 %v4086_v52, %s4325_s30 }
 0x9bb   : > { %v1742_v5 = vsel %vm5414_vm10, %v4074_v62, %v4075_v60  ;;  %v1741_v10 = vsel %vm5415_vm0, %v1736_v2, %v4074_v62  ;;  %v4096_v11 = vpack.i.bf16 %v4677_v55, %v4075_v60  ;;  %vm2203_vm0 = vcmask 39936  }
 0x9bc   : > { %v4101_v9 = vpack.i.bf16 %v1742_v5, %v1733_v1  ;;  %v4106_v12 = vpack.i.bf16 %v1741_v10, %v4680_v61  ;;  %v3382_v1 = vld [vmem:[%s5384_s1 + $0x28] sm:$0xff] }
 0x9be   : > { %4092 = vrot.lane.b32.xlu0 %v4091_v8, %s4325_s30  ;;  %4102 = vrot.lane.b32.xlu1 %v4101_v9, %s4325_s30 }
 0x9c2   : > { %4097 = vrot.lane.b32.xlu0 %v4096_v11, %s4325_s30  ;;  %4107 = vrot.lane.b32.xlu1 %v4106_v12, %s4325_s30 }
 0x9c6   : > { %1769 = vrot.lane.b32.xlu0 %v4669_v4, %s4325_s30 }
 0xa28   : > { %v4078_v13 = vpop.permute.xlu1 %4077 }
 0xa29   : > { %v4080_v14 = vunpack.i.h.bf16 %v4078_v13  ;;  %v4079_v3 = vunpack.i.l.bf16 %v4078_v13 }
 0xa2b   : > { %v3727_v15 = vpack.c.bf16 %v4080_v14, %v4060_v42  ;;  %v1776_v16 = vsel %vm381_vm13, %v4079_v3, %v4080_v14 }
 0xa2c   : > { %v4083_v17 = vpop.permute.xlu0 %4082  ;;  %v4088_v19 = vpop.permute.xlu1 %4087  ;;  %v3712_v20 = vpack.c.bf16 %v1776_v16, %v1718_v50 }
 0xa2d   : > { %v4084_v21 = vunpack.i.l.bf16 %v4083_v17  ;;  %3728 = vmatpush3.bf16.msra.mxu1 %v3727_v15  ;;  %v4085_v55 = vunpack.i.h.bf16 %v4083_v17  ;;  %v4089_v61 = vunpack.i.l.bf16 %v4088_v19  ;;  %v4090_v26 = vunpack.i.h.bf16 %v4088_v19 }
 0xa2e   : > { %3713 = vmatprep.subr.bf16.mxu0 %v3712_v20  ;;  %3729 = vmatprep.subr.bf16.mxu1 %v4332_v39 }
 0xa2f   : > { %v1775_v22 = vsel %vm381_vm13, %v4084_v21, %v4079_v3  ;;  %v1778_v34 = vsel %vm381_vm13, %v4085_v55, %v4089_v61 }
 0xa30   : > { %v3714_v23 = vpack.c.bf16 %v1775_v22, %v1717_v46  ;;  %v4093_v4 = vpop.permute.xlu0 %4092  ;;  %v4103_v24 = vpop.permute.xlu1 %4102 }
 0xa31   : > { %v4095_v27 = vunpack.i.h.bf16 %v4093_v4  ;;  %v4094_v30 = vunpack.i.l.bf16 %v4093_v4  ;;  %v4104_v32 = vunpack.i.l.bf16 %v4103_v24  ;;  %v4105_v45 = vunpack.i.h.bf16 %v4103_v24 }
 0xa32   : > { %3715 = vmatpush1.bf16.msra.mxu0 %v3714_v23 }
 0xa33   : > { %v1777_v36 = vsel %vm381_vm13, %v4095_v27, %v4085_v55  ;;  %v3730_v37 = vpack.c.bf16 %v4094_v30, %v4089_v61  ;;  %v1779_v42 = vsel %vm381_vm13, %v4104_v32, %v4090_v26  ;;  %v1780_v47 = vsel %vm381_vm13, %v4090_v26, %v4094_v30 }
 0xa34   : > { %v3718_v49 = vpack.c.bf16 %v1779_v42, %v1777_v36  ;;  %v4098_v50 = vpop.permute.xlu0 %4097  ;;  %v4108_v51 = vpop.permute.xlu1 %4107  ;;  %v3716_v35 = vpack.c.bf16 %v1780_v47, %v1778_v34 }
 0xa35   : > { %v4100_v38 = vunpack.i.h.bf16 %v4098_v50  ;;  %v4099_v43 = vunpack.i.l.bf16 %v4098_v50  ;;  %v4110_v41 = vunpack.i.h.bf16 %v4108_v51  ;;  %v4928_v44 = vunpack.i.l.bf16 %v4108_v51  ;;  %3731 = vmatpush3.bf16.msra.mxu1 %v3730_v37  ;;  %v2186_v51 = vld [vmem:[#allocation2 + $0x10] sm:$0xf] }
 0xa36   : > { %3717 = vmatprep.subr.bf16.mxu0 %v3716_v35  ;;  %3732 = vmatprep.subr.bf16.mxu1 %v4332_v39  ;;  %v2185_v35 = vld [vmem:[#allocation2 + $0x8] sm:$0xf] }
 0xa37   : > { %v1782_v52 = vsel %vm381_vm13, %v4105_v45, %v4099_v43  ;;  %v4934_v46 = vsel %vm381_vm13, %v4100_v38, %v4928_v44  ;;  %v3733_v53 = vpack.c.bf16 %v4928_v44, %v4099_v43  ;;  %3719 = vmatpush1.bf16.msra.mxu0 %v3718_v49  ;;  %v1781_v60 = vsel %vm381_vm13, %v4110_v41, %v4105_v45  ;;  %v2184_v43 = vld [vmem:[#allocation2] sm:$0xf] }
 0xa38   : > { %v3720_v58 = vpack.c.bf16 %v4934_v46, %v1782_v52  ;;  %v1770_v59 = vpop.permute.xlu0 %1769 }
 0xa39   : > { %v4940_v62 = vsel %vm381_vm13, %v1770_v59, %v4100_v38  ;;  %3735 = vmatpush3.bf16.msk.msra.mxu1 %vm4576_vm11, %v3733_v53  ;;  %v2188_v38 = vsel %vm489_vm1, %v2185_v35, %v4760_v25 }
 0xa3a   : > { %v3723_v54 = vpack.c.bf16 %v4940_v62, %v1781_v60  ;;  %3722 = vmatprep.subr.msk.bf16.mxu0 %vm4576_vm11, %v3720_v58  ;;  %3746 = vmatprep.subr.bf16.mxu1 %v4332_v39 }
 0xa3c   : > { %3725 = vmatpush1.bf16.msk.msra.mxu0 %vm4576_vm11, %v3723_v54  ;;  %3582 = vmatmul.mubr.msk.f32.vlgmr.msra.gmra.mrb[12].mxu1 %vm5395_vm5, %v3382_v1 }
 0xa3d   : > { %3592 = vmatprep.mubr.msk.f32.mxu1 %vm4333_vm6, %v4328_v31 }
 0xa3f   : > { %3385 = vmatmul.mubr.msk.f32.vlgmr.msra.gmra.mrb[8].mxu0 %vm5395_vm5, %v3382_v1 }
 0xa40   : > { %2104 = vmatprep.mubr.f32.mxu0 %v4328_v31 }
 0xb0f   : > { %v1947_v5 = vpop.f32.mrb[12].mxu1 }
 0xb10   : > { %v3583_v2 = vpop.f32.mrb[13].mxu1  ;;  %v1953_v11 = vmax.f32 %v1947_v5, 0.0 }
 0xb12   : > { %v1876_v8 = vpop.f32.mrb[8].mxu0  ;;  %v1956_v3 = vsel %vm688_vm3, %v1953_v11, 0.0 }
 0xb13   : > { %v1951_v9 = vmax.f32 %v1876_v8, 0.0  ;;  %v1878_v10 = vpop.f32.mrb[9].mxu0 }
 0xb14   : > { %v1952_v12 = vmax.f32 %v1878_v10, 0.0 }
 0xb15   : > { %v1954_v13 = vsel %vm686_vm7, %v1951_v9, 0.0 }
 0xb16   : > { %v1955_v14 = vsel %vm687_vm12, %v1952_v12, 0.0  ;;  %1960 = vrot.lane.b32.xlu1 %v1954_v13, %s4318_s14 }
 0xb17   : > { %1962 = vrot.lane.b32.xlu0 %v1955_v14, %s4318_s14 }
 0xb1a   : > { %1964 = vrot.lane.b32.xlu1 %v1956_v3, %s4318_s14 }
 0xb88   : > { %v1961_v15 = vpop.permute.xlu1 %1960 }
 0xb89   : > { %1971 = vst.msk [vmem:[#allocation4] sm:$0xff] %vm1700_vm8, %v1961_v15  ;;  %v1963_v16 = vpop.permute.xlu0 %1962 }
 0xb8a   : > { %v1966_v21 = vsel %vm701_vm4, %v1961_v15, %v1963_v16 }
 0xb8c   : > { %v1965_v17 = vpop.permute.xlu1 %1964 }
 0xb8d   : > { %v1967_v19 = vsel %vm701_vm4, %v1963_v16, %v1965_v17 }
 0xb8e   : > { %1973 = vst.msk [vmem:[#allocation4 + $0x10] sm:$0xff] %vm1703_vm2, %v1967_v19 }
 0xb90   : > { %v1974_v20 = vld [vmem:[#allocation4] sm:$0xff] }
 0xb91   : > { %1980 = vrot.lane.b32.xlu1 %v1974_v20, %s4325_s30 }
 0xb95   : > { %1988 = vrot.lane.b32.xlu1 %v1974_v20, %s4324_s29  ;;  %v1976_v55 = vld [vmem:[#allocation4 + $0x10] sm:$0xff] }
 0xb96   : > { %v4111_v61 = vpack.i.bf16 %v1976_v55, %v1966_v21  ;;  %v3388_v21 = vld [vmem:[%s5384_s1 + $0x30] sm:$0xff] }
 0xb98   : > { %4112 = vrot.lane.b32.xlu0 %v4111_v61, %s4325_s30 }
 0xb9c   : > { %4117 = vrot.lane.b32.xlu0 %v4111_v61, %s4324_s29 }
 0xc03   : > { %v1981_v24 = vpop.permute.xlu1 %1980 }
 0xc07   : > { %v1989_v47 = vpop.permute.xlu1 %1988 }
 0xc0a   : > { %v4113_v22 = vpop.permute.xlu0 %4112 }
 0xc0b   : > { %v4115_v23 = vunpack.i.h.bf16 %v4113_v22  ;;  %v4114_v4 = vunpack.i.l.bf16 %v4113_v22 }
 0xc0d   : > { %v1987_v26 = vsel %vm381_vm13, %v4114_v4, %v4115_v23  ;;  %v1986_v36 = vsel %vm381_vm13, %v1981_v24, %v4114_v4 }
 0xc0e   : > { %v4121_v27 = vpack.i.bf16 %v4115_v23, %v1987_v26  ;;  %v4118_v30 = vpop.permute.xlu0 %4117  ;;  %v3394_v23 = vld [vmem:[%s5384_s1 + $0x38] sm:$0xff] }
 0xc0f   : > { %v4120_v32 = vunpack.i.h.bf16 %v4118_v30  ;;  %v4119_v34 = vunpack.i.l.bf16 %v4118_v30 }
 0xc10   : > { %4122 = vrot.lane.b32.xlu0 %v4121_v27, %s4324_s29 }
 0xc11   : > { %v4126_v37 = vpack.i.bf16 %v4738_v6, %v4120_v32  ;;  %v1995_v42 = vsel %vm396_vm14, %v4119_v34, %v4120_v32  ;;  %v1994_v49 = vsel %vm396_vm14, %v1989_v47, %v4119_v34  ;;  %v2189_v6 = vsel %vm489_vm1, %v2186_v51, %v4767_v33 }
 0xc12   : > { %v4131_v45 = vpack.i.bf16 %v1995_v42, %v1986_v36  ;;  %v4136_v50 = vpack.i.bf16 %v1994_v49, %v4740_v7  ;;  %v2187_v7 = vsel %vm489_vm1, %v2184_v43, %v4750_v18  ;;  %vm5416_vm1 = vcmask 203776  }
 0xc13   : > { %vm5417_vm10 = vmmov %vm5416_vm1 }
 0xc14   : > { %4127 = vrot.lane.b32.xlu0 %v4126_v37, %s4324_s29  ;;  %4132 = vrot.lane.b32.xlu1 %v4131_v45, %s4324_s29 }
 0xc18   : > { %2010 = vrot.lane.b32.xlu0 %v4735_v63, %s4324_s29  ;;  %4137 = vrot.lane.b32.xlu1 %v4136_v50, %s4324_s29 }
 0xc1c   : > { %2199 = vrot.lane.b32.xlu0 %v2189_v6, %s4323_s28  ;;  %2197 = vrot.lane.b32.xlu1 %v2188_v38, %s4323_s28 }
 0xc20   : > { %2195 = vrot.lane.b32.xlu1 %v2187_v7, %s4323_s28 }
 0xc82   : > { %v4123_v63 = vpop.permute.xlu0 %4122 }
 0xc83   : > { %v4125_v41 = vunpack.i.h.bf16 %v4123_v63  ;;  %v4124_v52 = vunpack.i.l.bf16 %v4123_v63 }
 0xc85   : > { %v3747_v53 = vpack.c.bf16 %v4125_v41, %v4120_v32  ;;  %v2017_v58 = vsel %vm396_vm14, %v4124_v52, %v4125_v41 }
 0xc86   : > { %v4128_v33 = vpop.permute.xlu0 %4127  ;;  %v4133_v59 = vpop.permute.xlu1 %4132  ;;  %v3736_v60 = vpack.c.bf16 %v2017_v58, %v1995_v42 }
 0xc87   : > { %v4134_v25 = vunpack.i.l.bf16 %v4133_v59  ;;  %3748 = vmatpush3.bf16.msra.mxu1 %v3747_v53  ;;  %v4129_v54 = vunpack.i.l.bf16 %v4128_v33  ;;  %v4135_v1 = vunpack.i.h.bf16 %v4133_v59  ;;  %v4130_v9 = vunpack.i.h.bf16 %v4128_v33 }
 0xc88   : > { %3737 = vmatprep.subr.bf16.mxu0 %v3736_v60  ;;  %3749 = vmatprep.subr.bf16.mxu1 %v4332_v39 }
 0xc89   : > { %v2016_v18 = vsel %vm396_vm14, %v4134_v25, %v4124_v52  ;;  %v2019_v12 = vsel %vm396_vm14, %v4135_v1, %v4129_v54 }
 0xc8a   : > { %v3738_v5 = vpack.c.bf16 %v2016_v18, %v1994_v49  ;;  %v2011_v2 = vpop.permute.xlu0 %2010  ;;  %v4138_v8 = vpop.permute.xlu1 %4137 }
 0xc8b   : > { %v4140_v10 = vunpack.i.h.bf16 %v4138_v8  ;;  %v4999_v11 = vunpack.i.l.bf16 %v4138_v8  ;;  %v5003_v13 = vsel %vm396_vm14, %v2011_v2, %v4130_v9 }
 0xc8c   : > { %3739 = vmatpush1.bf16.msra.mxu0 %v3738_v5 }
 0xc8d   : > { %v2018_v14 = vsel %vm396_vm14, %v4140_v10, %v4135_v1  ;;  %v5008_v3 = vsel %vm396_vm14, %v4130_v9, %v4999_v11  ;;  %v3750_v15 = vpack.c.bf16 %v4999_v11, %v4129_v54 }
 0xc8e   : > { %v3740_v16 = vpack.c.bf16 %v5008_v3, %v2019_v12  ;;  %v3743_v17 = vpack.c.bf16 %v5003_v13, %v2018_v14  ;;  %v2200_v19 = vpop.permute.xlu0 %2199  ;;  %v2198_v20 = vpop.permute.xlu1 %2197 }
 0xc8f   : > { %3752 = vmatpush3.bf16.msk.msra.mxu1 %vm4576_vm11, %v3750_v15  ;;  %v2202_v55 = vsel %vm411_vm15, %v2198_v20, %v2200_v19 }
 0xc90   : > { %3742 = vmatprep.subr.msk.bf16.mxu0 %vm4576_vm11, %v3740_v16  ;;  %3595 = vmatprep.subr.mxu1 %v4328_v31 }
 0xc91   : > { %3745 = vmatpush1.bf16.msk.msra.mxu0 %vm4576_vm11, %v3743_v17 }
 0xc92   : > { %v2196_v61 = vpop.permute.xlu1 %2195  ;;  %3395 = vmatprep.subr.msk.mxu0 %vm501_vm9, %v2202_v55  ;;  %3593 = vmatmul.mubr.msk.f32.vlgmr.msra.gmra.mrb[14].mxu1 %vm5416_vm1, %v3388_v21  ;;  %vm5419_vm1 = vcmask 1006592  }
 0xc93   : > { %v2201_v22 = vsel %vm411_vm15, %v2196_v61, %v2198_v20  ;;  %3596 = vmatpush3.msk.msra.mxu1 %vm501_vm9, %v2200_v19  ;;  %3597 = vmatprep.mubr.msk.f32.mxu1 %vm4333_vm6, %v4328_v31 }
 0xc94   : > { %3391 = vmatmul.mubr.msk.f32.vlgmr.msra.gmra.mrb[10].mxu0 %vm5417_vm10, %v3388_v21  ;;  %3769 = vmatprep.subr.bf16.mxu1 %v4332_v39 }
 0xc95   : > { %3396 = vmatpush1.msk.msra.mxu0 %vm501_vm9, %v2201_v22  ;;  %2277 = vmatprep.mubr.f32.mxu0 %v4328_v31  ;;  %vm5418_vm9 = vcmask 1014784  }
 0xc96   : > { %3598 = vmatmul.mubr.msk.f32.vlgmr.msra.gmra.mrb[16].mxu1 %vm2203_vm0, %v3394_v23  ;;  %vm5420_vm10 = vmmov %vm5418_vm9 }
 0xc97   : > { %3618 = vmatprep.mubr.msk.f32.mxu1 %vm4333_vm6, %v4328_v31 }
 0xc98   : > { %3397 = vmatmul.mubr.msk.f32.vlgmr.msra.gmra.mrb[12].mxu0 %vm2203_vm0, %v3394_v23  ;;  %vm5421_vm0 = vmmov %vm5419_vm1 }
 0xc99   : > { %2530 = vmatprep.mubr.f32.mxu0 %v4328_v31 }
 0xd65   : > { %v2177_v4 = vpop.f32.mrb[14].mxu1 }
 0xd66   : > { %v2183_v24 = vmax.f32 %v2177_v4, 0.0  ;;  %v3594_v26 = vpop.f32.mrb[15].mxu1 }
 0xd67   : > { %v2106_v27 = vpop.f32.mrb[10].mxu0 }
 0xd68   : > { %v2108_v30 = vpop.f32.mrb[11].mxu0  ;;  %v2181_v34 = vmax.f32 %v2106_v27, 0.0 }
 0xd69   : > { %v2350_v32 = vpop.f32.mrb[16].mxu1  ;;  %v2182_v42 = vmax.f32 %v2108_v30, 0.0 }
 0xd6a   : > { %v2356_v36 = vadd.f32 %v2350_v32, %v2183_v24  ;;  %v3599_v37 = vpop.f32.mrb[17].mxu1 }
 0xd6b   : > { %v2279_v47 = vpop.f32.mrb[12].mxu0 }
 0xd6c   : > { %v2354_v45 = vadd.f32 %v2279_v47, %v2181_v34  ;;  %v2281_v49 = vpop.f32.mrb[13].mxu0  ;;  %v2359_v6 = vsel %vm688_vm3, %v2356_v36, 0.0 }
 0xd6d   : > { %v2355_v50 = vadd.f32 %v2281_v49, %v2182_v42 }
 0xd6e   : > { %v2357_v51 = vsel %vm686_vm7, %v2354_v45, 0.0 }
 0xd6f   : > { %v2358_v35 = vsel %vm687_vm12, %v2355_v50, 0.0  ;;  %2363 = vrot.lane.b32.xlu0 %v2357_v51, %s4318_s14 }
 0xd70   : > { %2365 = vrot.lane.b32.xlu1 %v2358_v35, %s4318_s14 }
 0xd73   : > { %2367 = vrot.lane.b32.xlu0 %v2359_v6, %s4318_s14 }
 0xde1   : > { %v2364_v38 = vpop.permute.xlu0 %2363 }
 0xde2   : > { %2374 = vst.msk [vmem:[#allocation2] sm:$0xff] %vm1700_vm8, %v2364_v38  ;;  %v2366_v43 = vpop.permute.xlu1 %2365 }
 0xde3   : > { %v2369_v7 = vsel %vm701_vm4, %v2364_v38, %v2366_v43 }
 0xde4   : > { %2375 = vst [vmem:[#allocation2 + $0x8] sm:$0xff] %v2369_v7 }
 0xde5   : > { %v2368_v63 = vpop.permute.xlu0 %2367 }
 0xde6   : > { %v2370_v41 = vsel %vm701_vm4, %v2366_v43, %v2368_v63 }
 0xde7   : > { %2376 = vst.msk [vmem:[#allocation2 + $0x10] sm:$0xff] %vm1703_vm2, %v2370_v41 }
 0xde9   : > { %v2377_v52 = vld [vmem:[#allocation2] sm:$0xff] }
 0xdea   : > { %2394 = vrot.lane.b32.xlu1 %v2377_v52, %s4324_s29  ;;  %2383 = vrot.lane.b32.xlu0 %v2377_v52, %s4325_s30 }
 0xdee   : > { %2416 = vrot.lane.b32.xlu1 %v2377_v52, %s4326_s5  ;;  %2405 = vrot.lane.b32.xlu0 %v2377_v52, %s4323_s28  ;;  %v2379_v53 = vld [vmem:[#allocation2 + $0x10] sm:$0xff] }
 0xdef   : > { %v4141_v58 = vpack.i.bf16 %v2379_v53, %v2369_v7 }
 0xdf2   : > { %2427 = vrot.lane.b32.xlu0 %v2377_v52, %s4327_s6  ;;  %4142 = vrot.lane.b32.xlu1 %v4141_v58, %s4325_s30 }
 0xdf6   : > { %4152 = vrot.lane.b32.xlu0 %v4141_v58, %s4323_s28  ;;  %4147 = vrot.lane.b32.xlu1 %v4141_v58, %s4324_s29 }
 0xdfa   : > { %4162 = vrot.lane.b32.xlu0 %v4141_v58, %s4327_s6  ;;  %4157 = vrot.lane.b32.xlu1 %v4141_v58, %s4326_s5 }
 0xdfe   : > { %4172 = vrot.lane.b32.xlu0 %v4141_v58, %s4330_s9  ;;  %4167 = vrot.lane.b32.xlu1 %v4141_v58, %s4329_s7 }
 0xe02   : > { %2449 = vrot.lane.b32.xlu0 %v2377_v52, %s4330_s9  ;;  %2438 = vrot.lane.b32.xlu1 %v2377_v52, %s4329_s7 }
 0xe5c   : > { %v2395_v33 = vpop.permute.xlu1 %2394  ;;  %v2384_v59 = vpop.permute.xlu0 %2383 }
 0xe60   : > { %v2417_v60 = vpop.permute.xlu1 %2416  ;;  %v2406_v25 = vpop.permute.xlu0 %2405 }
 0xe64   : > { %v4143_v54 = vpop.permute.xlu1 %4142  ;;  %v2428_v1 = vpop.permute.xlu0 %2427 }
 0xe65   : > { %v4145_v18 = vunpack.i.h.bf16 %v4143_v54  ;;  %v4144_v5 = vunpack.i.l.bf16 %v4143_v54 }
 0xe67   : > { %v3770_v2 = vpack.c.bf16 %v4145_v18, %v2379_v53  ;;  %v2389_v8 = vsel %vm381_vm13, %v2384_v59, %v4144_v5  ;;  %v2390_v9 = vsel %vm381_vm13, %v4144_v5, %v4145_v18 }
 0xe68   : > { %v3755_v10 = vpack.c.bf16 %v2389_v8, %v2377_v52  ;;  %v4148_v12 = vpop.permute.xlu1 %4147  ;;  %v4153_v14 = vpop.permute.xlu0 %4152  ;;  %v3753_v15 = vpack.c.bf16 %v2390_v9, %v2369_v7 }
 0xe69   : > { %v4150_v16 = vunpack.i.h.bf16 %v4148_v12  ;;  %v4149_v17 = vunpack.i.l.bf16 %v4148_v12  ;;  %v4155_v19 = vunpack.i.h.bf16 %v4153_v14  ;;  %v4154_v20 = vunpack.i.l.bf16 %v4153_v14  ;;  %3771 = vmatpush3.bf16.msra.mxu1 %v3770_v2 }
 0xe6a   : > { %3754 = vmatprep.subr.bf16.mxu0 %v3753_v15  ;;  %3772 = vmatprep.subr.bf16.mxu1 %v4332_v39 }
 0xe6b   : > { %v2400_v21 = vsel %vm396_vm14, %v2395_v33, %v4149_v17  ;;  %v3773_v55 = vpack.c.bf16 %v4155_v19, %v4150_v16  ;;  %v2411_v61 = vsel %vm411_vm15, %v2406_v25, %v4154_v20  ;;  %3756 = vmatpush1.bf16.msra.mxu0 %v3755_v10  ;;  %v2401_v22 = vsel %vm396_vm14, %v4149_v17, %v4150_v16 }
 0xe6c   : > { %v3759_v23 = vpack.c.bf16 %v2411_v61, %v2400_v21  ;;  %v4158_v4 = vpop.permute.xlu1 %4157  ;;  %v4163_v24 = vpop.permute.xlu0 %4162  ;;  %v2412_v26 = vsel %vm411_vm15, %v4154_v20, %v4155_v19 }
 0xe6d   : > { %v4160_v27 = vunpack.i.h.bf16 %v4158_v4  ;;  %v4159_v30 = vunpack.i.l.bf16 %v4158_v4  ;;  %v4165_v32 = vunpack.i.h.bf16 %v4163_v24  ;;  %v4164_v34 = vunpack.i.l.bf16 %v4163_v24  ;;  %3774 = vmatpush3.bf16.msra.mxu1 %v3773_v55 }
 0xe6e   : > { %v3757_v36 = vpack.c.bf16 %v2412_v26, %v2401_v22  ;;  %3775 = vmatprep.subr.bf16.mxu1 %v4332_v39 }
 0xe6f   : > { %v2422_v37 = vsel %vm5418_vm9, %v2417_v60, %v4159_v30  ;;  %v3776_v42 = vpack.c.bf16 %v4165_v32, %v4160_v27  ;;  %v2433_v47 = vsel %vm5419_vm1, %v2428_v1, %v4164_v34  ;;  %v2423_v45 = vsel %vm5420_vm10, %v4159_v30, %v4160_v27  ;;  %v3400_v1 = vld [vmem:[%s5384_s1 + $0x40] sm:$0xff] }
 0xe70   : > { %v3763_v49 = vpack.c.bf16 %v2433_v47, %v2422_v37  ;;  %3758 = vmatprep.subr.bf16.mxu0 %v3757_v36  ;;  %v4168_v50 = vpop.permute.xlu1 %4167  ;;  %v4173_v51 = vpop.permute.xlu0 %4172  ;;  %v2434_v35 = vsel %vm5421_vm0, %v4164_v34, %v4165_v32  ;;  %vm5422_vm9 = vcmask 998400   ;;  %vm5423_vm1 = vcmask 990208  }
 0xe71   : > { %3760 = vmatpush1.bf16.msra.mxu0 %v3759_v23  ;;  %v4170_v6 = vunpack.i.h.bf16 %v4168_v50  ;;  %v4169_v38 = vunpack.i.l.bf16 %v4168_v50  ;;  %v4175_v43 = vunpack.i.h.bf16 %v4173_v51  ;;  %v4174_v7 = vunpack.i.l.bf16 %v4173_v51  ;;  %3777 = vmatpush3.bf16.msra.mxu1 %v3776_v42  ;;  %vm5424_vm10 = vmmov %vm5422_vm9 }
 0xe72   : > { %v3761_v63 = vpack.c.bf16 %v2434_v35, %v2423_v45  ;;  %3778 = vmatprep.subr.bf16.mxu1 %v4332_v39  ;;  %vm5425_vm0 = vmmov %vm5423_vm1 }
 0xe73   : > { %v3779_v41 = vpack.c.bf16 %v4175_v43, %v4170_v6  ;;  %v2445_v52 = vsel %vm5422_vm9, %v4169_v38, %v4170_v6  ;;  %v2456_v53 = vsel %vm5423_vm1, %v4174_v7, %v4175_v43  ;;  %vm2462_vm9 = vcmask 531456  }
 0xe74   : > { %3762 = vmatprep.subr.bf16.mxu0 %v3761_v63  ;;  %v2439_v58 = vpop.permute.xlu1 %2438  ;;  %v2450_v33 = vpop.permute.xlu0 %2449  ;;  %v3765_v59 = vpack.c.bf16 %v2456_v53, %v2445_v52  ;;  %vm5426_vm1 = vcmask 1040384  }
 0xe75   : > { %3764 = vmatpush1.bf16.msra.mxu0 %v3763_v49  ;;  %v2444_v60 = vsel %vm5424_vm10, %v2439_v58, %v4169_v38  ;;  %v2455_v25 = vsel %vm5425_vm0, %v2450_v33, %v4174_v7  ;;  %3780 = vmatpush3.bf16.msra.mxu1 %v3779_v41  ;;  %vm5427_vm5 = vmmov %vm5426_vm1 }
 0xe76   : > { %v3767_v54 = vpack.c.bf16 %v2455_v25, %v2444_v60  ;;  %3766 = vmatprep.subr.bf16.mxu0 %v3765_v59  ;;  %3616 = vmatprep.subr.mxu1 %v4328_v31  ;;  %vm5428_vm10 = vmmov %vm5426_vm1 }
 0xe79   : > { %3768 = vmatpush1.bf16.msra.mxu0 %v3767_v54  ;;  %3617 = vmatpush3.msk.msra.mxu1 %vm5426_vm1, %v4607_v48 }
 0xe7a   : > { %3401 = vmatprep.subr.msk.mxu0 %vm5427_vm5, %v4563_v28  ;;  %3619 = vmatmul.mubr.msk.f32.vlgmr.msra.gmra.mrb[18].mxu1 %vm2462_vm9, %v3400_v1  ;;  %vm5429_vm5 = vcmask 1014784  }
 0xe7b   : > { %3795 = vmatprep.subr.bf16.mxu1 %v4332_v39  ;;  %3633 = vmatprep.mubr.msk.f32.mxu1 %vm4333_vm6, %v4328_v31  ;;  %vm5430_vm0 = vmmov %vm5429_vm5 }
 0xe7d   : > { %3402 = vmatpush1.msk.msra.mxu0 %vm5428_vm10, %v4567_v29 }
 0xe7e   : > { %3403 = vmatmul.mubr.msk.f32.vlgmr.msra.gmra.mrb[14].mxu0 %vm2462_vm9, %v3400_v1 }
 0xe7f   : > { %2784 = vmatprep.mubr.f32.mxu0 %v4328_v31 }
 0xf4d   : > { %v2603_v18 = vpop.f32.mrb[18].mxu1 }
 0xf4e   : > { %v3620_v5 = vpop.f32.mrb[19].mxu1  ;;  %v2609_v9 = vmax.f32 %v2603_v18, 0.0 }
 0xf50   : > { %v2612_v29 = vsel %vm688_vm3, %v2609_v9, 0.0 }
 0xf51   : > { %v2532_v2 = vpop.f32.mrb[14].mxu0 }
 0xf52   : > { %v2607_v8 = vmax.f32 %v2532_v2, 0.0  ;;  %v2534_v48 = vpop.f32.mrb[15].mxu0 }
 0xf53   : > { %v2608_v10 = vmax.f32 %v2534_v48, 0.0 }
 0xf54   : > { %v2610_v28 = vsel %vm686_vm7, %v2607_v8, 0.0 }
 0xf55   : > { %v2611_v12 = vsel %vm687_vm12, %v2608_v10, 0.0  ;;  %2616 = vrot.lane.b32.xlu1 %v2610_v28, %s4318_s14 }
 0xf56   : > { %2618 = vrot.lane.b32.xlu0 %v2611_v12, %s4318_s14 }
 0xf59   : > { %2620 = vrot.lane.b32.xlu1 %v2612_v29, %s4318_s14 }
 0xfc7   : > { %v2617_v14 = vpop.permute.xlu1 %2616 }
 0xfc8   : > { %2627 = vst.msk [vmem:[#allocation3] sm:$0xff] %vm1700_vm8, %v2617_v14  ;;  %v2619_v15 = vpop.permute.xlu0 %2618 }
 0xfc9   : > { %v2622_v16 = vsel %vm701_vm4, %v2617_v14, %v2619_v15 }
 0xfca   : > { %2628 = vst [vmem:[#allocation3 + $0x8] sm:$0xff] %v2622_v16 }
 0xfcb   : > { %v2621_v17 = vpop.permute.xlu1 %2620 }
 0xfcc   : > { %v2623_v19 = vsel %vm701_vm4, %v2619_v15, %v2621_v17 }
 0xfcd   : > { %2629 = vst.msk [vmem:[#allocation3 + $0x10] sm:$0xff] %vm1703_vm2, %v2623_v19 }
 0xfcf   : > { %v2630_v20 = vld [vmem:[#allocation3] sm:$0xff] }
 0xfd0   : > { %2644 = vrot.lane.b32.xlu0 %v2630_v20, %s4324_s29  ;;  %2636 = vrot.lane.b32.xlu1 %v2630_v20, %s4325_s30 }
 0xfd4   : > { %v2632_v21 = vld [vmem:[#allocation3 + $0x10] sm:$0xff] }
 0xfd5   : > { %v4186_v55 = vpack.i.bf16 %v2632_v21, %v2622_v16 }
 0xfd7   : > { %4187 = vrot.lane.b32.xlu1 %v4186_v55, %s4323_s28  ;;  %4177 = vrot.lane.b32.xlu0 %v4186_v55, %s4325_s30 }
 0xfdb   : > { %2652 = vrot.lane.b32.xlu1 %v2630_v20, %s4323_s28  ;;  %4182 = vrot.lane.b32.xlu0 %v4186_v55, %s4324_s29 }
 0xfdf   : > { %2660 = vrot.lane.b32.xlu1 %v2630_v20, %s4326_s5  ;;  %4192 = vrot.lane.b32.xlu0 %v4186_v55, %s4326_s5 }
0x1042   : > { %v2645_v61 = vpop.permute.xlu0 %2644  ;;  %v2637_v22 = vpop.permute.xlu1 %2636 }
0x1049   : > { %v4178_v23 = vpop.permute.xlu0 %4177  ;;  %v4188_v4 = vpop.permute.xlu1 %4187 }
0x104a   : > { %v4180_v24 = vunpack.i.h.bf16 %v4178_v23  ;;  %v4179_v26 = vunpack.i.l.bf16 %v4178_v23  ;;  %v4190_v27 = vunpack.i.h.bf16 %v4188_v4  ;;  %v4189_v30 = vunpack.i.l.bf16 %v4188_v4 }
0x104c   : > { %v2643_v32 = vsel %vm381_vm13, %v4179_v26, %v4180_v24  ;;  %v2659_v47 = vsel %vm411_vm15, %v4189_v30, %v4190_v27  ;;  %v2642_v49 = vsel %vm381_vm13, %v2637_v22, %v4179_v26 }
0x104d   : > { %v4196_v34 = vpack.i.bf16 %v4180_v24, %v2643_v32  ;;  %v4183_v36 = vpop.permute.xlu0 %4182  ;;  %v2653_v45 = vpop.permute.xlu1 %2652 }
0x104e   : > { %v4185_v37 = vunpack.i.h.bf16 %v4183_v36  ;;  %v4184_v42 = vunpack.i.l.bf16 %v4183_v36  ;;  %v2658_v63 = vsel %vm411_vm15, %v2653_v45, %v4189_v30  ;;  %vm5431_vm15 = vcmask 334848  }
0x104f   : > { %4197 = vrot.lane.b32.xlu0 %v4196_v34, %s4325_s30  ;;  %vm5432_vm9 = vmmov %vm5431_vm15 }
0x1050   : > { %v2651_v50 = vsel %vm396_vm14, %v4184_v42, %v4185_v37  ;;  %v4206_v51 = vpack.i.bf16 %v2659_v47, %v4185_v37  ;;  %v2650_v38 = vsel %vm396_vm14, %v2645_v61, %v4184_v42 }
0x1051   : > { %v4201_v35 = vpack.i.bf16 %v2651_v50, %v2642_v49  ;;  %v4193_v6 = vpop.permute.xlu0 %4192  ;;  %v4211_v52 = vpack.i.bf16 %v2650_v38, %v4190_v27  ;;  %v2661_v58 = vpop.permute.xlu1 %2660 }
0x1052   : > { %v4195_v43 = vunpack.i.h.bf16 %v4193_v6  ;;  %v4194_v7 = vunpack.i.l.bf16 %v4193_v6 }
0x1053   : > { %4202 = vrot.lane.b32.xlu1 %v4201_v35, %s4325_s30  ;;  %4207 = vrot.lane.b32.xlu0 %v4206_v51, %s4325_s30 }
0x1054   : > { %v2667_v41 = vsel %vm5429_vm5, %v4194_v7, %v4195_v43  ;;  %v2666_v33 = vsel %vm5430_vm0, %v2661_v58, %v4194_v7 }
0x1055   : > { %v4216_v53 = vpack.i.bf16 %v2667_v41, %v2658_v63  ;;  %v4221_v59 = vpack.i.bf16 %v2666_v33, %v4195_v43 }
0x1057   : > { %4212 = vrot.lane.b32.xlu1 %v4211_v52, %s4325_s30  ;;  %4217 = vrot.lane.b32.xlu0 %v4216_v53, %s4325_s30 }
0x105b   : > { %4222 = vrot.lane.b32.xlu1 %v4221_v59, %s4325_s30 }
0x10c1   : > { %v4198_v60 = vpop.permute.xlu0 %4197 }
0x10c2   : > { %v4200_v25 = vunpack.i.h.bf16 %v4198_v60  ;;  %v4199_v54 = vunpack.i.l.bf16 %v4198_v60 }
0x10c4   : > { %v3796_v1 = vpack.c.bf16 %v4200_v25, %v4180_v24  ;;  %v2695_v18 = vsel %vm381_vm13, %v4199_v54, %v4200_v25 }
0x10c5   : > { %v4203_v5 = vpop.permute.xlu1 %4202  ;;  %v4208_v2 = vpop.permute.xlu0 %4207  ;;  %v3781_v8 = vpack.c.bf16 %v2695_v18, %v2643_v32 }
0x10c6   : > { %v4204_v48 = vunpack.i.l.bf16 %v4203_v5  ;;  %3797 = vmatpush3.bf16.msra.mxu1 %v3796_v1  ;;  %v4205_v9 = vunpack.i.h.bf16 %v4203_v5  ;;  %v4209_v10 = vunpack.i.l.bf16 %v4208_v2  ;;  %v4210_v15 = vunpack.i.h.bf16 %v4208_v2 }
0x10c7   : > { %3782 = vmatprep.subr.bf16.mxu0 %v3781_v8  ;;  %3798 = vmatprep.subr.bf16.mxu1 %v4332_v39 }
0x10c8   : > { %v2694_v28 = vsel %vm381_vm13, %v4204_v48, %v4199_v54  ;;  %v2697_v20 = vsel %vm381_vm13, %v4205_v9, %v4209_v10 }
0x10c9   : > { %v3783_v12 = vpack.c.bf16 %v2694_v28, %v2642_v49  ;;  %v4213_v29 = vpop.permute.xlu1 %4212  ;;  %v4218_v14 = vpop.permute.xlu0 %4217 }
0x10ca   : > { %v4215_v16 = vunpack.i.h.bf16 %v4213_v29  ;;  %v4214_v17 = vunpack.i.l.bf16 %v4213_v29  ;;  %v4219_v19 = vunpack.i.l.bf16 %v4218_v14  ;;  %v4220_v26 = vunpack.i.h.bf16 %v4218_v14 }
0x10cb   : > { %3784 = vmatpush1.bf16.msra.mxu0 %v3783_v12 }
0x10cc   : > { %v2696_v21 = vsel %vm381_vm13, %v4215_v16, %v4205_v9  ;;  %v3799_v55 = vpack.c.bf16 %v4214_v17, %v4209_v10  ;;  %v2698_v61 = vsel %vm381_vm13, %v4219_v19, %v4210_v15  ;;  %v2699_v22 = vsel %vm381_vm13, %v4210_v15, %v4214_v17 }
0x10cd   : > { %v3787_v23 = vpack.c.bf16 %v2698_v61, %v2696_v21  ;;  %v4223_v4 = vpop.permute.xlu1 %4222  ;;  %v3785_v24 = vpack.c.bf16 %v2699_v22, %v2697_v20 }
0x10ce   : > { %v4225_v27 = vunpack.i.h.bf16 %v4223_v4  ;;  %v4224_v30 = vunpack.i.l.bf16 %v4223_v4  ;;  %3800 = vmatpush3.bf16.msra.mxu1 %v3799_v55 }
0x10cf   : > { %3786 = vmatprep.subr.bf16.mxu0 %v3785_v24  ;;  %3801 = vmatprep.subr.bf16.mxu1 %v4332_v39  ;;  %v3115_v24 = vld [vmem:[%s5386_s3 + $0x100] sm:$0xff] }
0x10d0   : > { %v2700_v32 = vsel %vm381_vm13, %v4225_v27, %v4220_v26  ;;  %v2701_v34 = vsel %vm381_vm13, %v4220_v26, %v4224_v30  ;;  %v3802_v36 = vpack.c.bf16 %v4928_v44, %v4224_v30  ;;  %3788 = vmatpush1.bf16.msra.mxu0 %v3787_v23  ;;  %v3406_v44 = vld [vmem:[%s5384_s1 + $0x48] sm:$0xff] }
0x10d1   : > { %v3789_v37 = vpack.c.bf16 %v4934_v46, %v2701_v34  ;;  %v3792_v42 = vpack.c.bf16 %v4940_v62, %v2700_v32  ;;  %v3116_v26 = vld [vmem:[%s5386_s3 + $0x108] sm:$0xff] }
0x10d2   : > { %3804 = vmatpush3.bf16.msk.msra.mxu1 %vm4576_vm11, %v3802_v36 }
0x10d3   : > { %3791 = vmatprep.subr.msk.bf16.mxu0 %vm4576_vm11, %v3789_v37  ;;  %3815 = vmatprep.subr.bf16.mxu1 %v4332_v39  ;;  %v3099_v37 = vld [vmem:[%s5386_s3 + $0x80] sm:$0xff] }
0x10d4   : > { %3794 = vmatpush1.bf16.msk.msra.mxu0 %vm4576_vm11, %v3792_v42  ;;  %v3100_v42 = vld [vmem:[%s5386_s3 + $0x88] sm:$0xff] }
0x10d5   : > { %3634 = vmatmul.mubr.msk.f32.vlgmr.msra.gmra.mrb[20].mxu1 %vm5431_vm15, %v3406_v44 }
0x10d6   : > { %3644 = vmatprep.mubr.msk.f32.mxu1 %vm4333_vm6, %v4328_v31 }
0x10d7   : > { %3409 = vmatmul.mubr.msk.f32.vlgmr.msra.gmra.mrb[16].mxu0 %vm5432_vm9, %v3406_v44 }
0x10d8   : > { %3000 = vmatprep.mubr.f32.mxu0 %v4328_v31 }
0x11a8   : > { %v2857_v46 = vpop.f32.mrb[20].mxu1 }
0x11a9   : > { %v3635_v62 = vpop.f32.mrb[21].mxu1  ;;  %v2863_v50 = vmax.f32 %v2857_v46, 0.0  ;;  %v3118_v46 = vld [vmem:[%s5386_s3 + $0x118] sm:$0xff] }
0x11aa   : > { %v2786_v47 = vpop.f32.mrb[16].mxu0  ;;  %v3412_v62 = vld [vmem:[%s5384_s1 + $0x50] sm:$0xff] }
0x11ab   : > { %v2861_v45 = vmax.f32 %v2786_v47, 0.0  ;;  %v2788_v49 = vpop.f32.mrb[17].mxu0  ;;  %v2866_v38 = vsel %vm688_vm3, %v2863_v50, 0.0  ;;  %v3822_v47 = vpack.c.bf16 %v3100_v42, %v3099_v37 }
0x11ac   : > { %v2862_v51 = vmax.f32 %v2788_v49, 0.0  ;;  %v3084_v49 = vld [vmem:[%s5386_s3 + $0x8] sm:$0xff] }
0x11ad   : > { %v2864_v35 = vsel %vm686_vm7, %v2861_v45, 0.0  ;;  %v3083_v45 = vld [vmem:[%s5386_s3] sm:$0xff] }
0x11ae   : > { %v2865_v6 = vsel %vm687_vm12, %v2862_v51, 0.0  ;;  %2870 = vrot.lane.b32.xlu0 %v2864_v35, %s4318_s14  ;;  %v3101_v51 = vld [vmem:[%s5386_s3 + $0x90] sm:$0xff]  ;;  %v3102_v35 = vld [vmem:[%s5386_s3 + $0x98] sm:$0xff] }
0x11af   : > { %2872 = vrot.lane.b32.xlu1 %v2865_v6, %s4318_s14 }
0x11b2   : > { %2874 = vrot.lane.b32.xlu0 %v2866_v38, %s4318_s14  ;;  %v3824_v38 = vpack.c.bf16 %v3084_v49, %v3083_v45  ;;  %s3352_s14 = sshll.u32 %s4420_s8, 3 }
0x1220   : > { %v2871_v43 = vpop.permute.xlu0 %2870 }
0x1221   : > { %2881 = vst.msk [vmem:[#allocation4] sm:$0xff] %vm1700_vm8, %v2871_v43  ;;  %v2873_v7 = vpop.permute.xlu1 %2872 }
0x1222   : > { %v2876_v63 = vsel %vm701_vm4, %v2871_v43, %v2873_v7  ;;  %v3085_v43 = vld [vmem:[%s5386_s3 + $0x10] sm:$0xff] }
0x1223   : > { %2882 = vst [vmem:[#allocation4 + $0x8] sm:$0xff] %v2876_v63 }
0x1224   : > { %v2875_v41 = vpop.permute.xlu0 %2874 }
0x1225   : > { %v2877_v52 = vsel %vm701_vm4, %v2873_v7, %v2875_v41  ;;  %v3086_v7 = vld [vmem:[%s5386_s3 + $0x18] sm:$0xff]  ;;  %vm3122_vm4 = vcmask 457728  }
0x1226   : > { %2883 = vst.msk [vmem:[#allocation4 + $0x10] sm:$0xff] %vm1703_vm2, %v2877_v52  ;;  %v3828_v41 = vpack.c.bf16 %v3086_v7, %v3085_v43 }
0x1228   : > { %v2884_v53 = vld [vmem:[#allocation4] sm:$0xff] }
0x1229   : > { %2890 = vrot.lane.b32.xlu0 %v2884_v53, %s4325_s30 }
0x122d   : > { %2898 = vrot.lane.b32.xlu0 %v2884_v53, %s4324_s29  ;;  %v2886_v58 = vld [vmem:[#allocation4 + $0x10] sm:$0xff] }
0x122e   : > { %v4226_v33 = vpack.i.bf16 %v2886_v58, %v2876_v63  ;;  %v3103_v63 = vld [vmem:[%s5386_s3 + $0xa0] sm:$0xff]  ;;  %v3088_v58 = vld [vmem:[%s5386_s3 + $0x28] sm:$0xff] }
0x122f   : > { %v3830_v52 = vpack.c.bf16 %v3104_v40, %v3103_v63  ;;  %v3087_v53 = vld [vmem:[%s5386_s3 + $0x20] sm:$0xff] }
0x1230   : > { %4227 = vrot.lane.b32.xlu1 %v4226_v33, %s4325_s30  ;;  %s3422_s30 = sshll.u32 %s3346_s19, 7  ;;  %s4337_s19 = smov [#allocation6]  }
0x1231   : > { %s5339_s23 = scalar_lea.hbm %s5387_s4, %s3422_s30  ;;  %s4255_s11 = sshll.u32 %s4337_s19, 4  ;;  %s4256_s11 = int_to_ptr.vmem [resolvable:$false] %s4255_s11 }
0x1232   : > { %s4257_s12 = scalar_lea.vmem %s4256_s11, 256 }
0x1234   : > { %4232 = vrot.lane.b32.xlu1 %v4226_v33, %s4324_s29  ;;  %v3105_v33 = vld [vmem:[%s5386_s3 + $0xb0] sm:$0xff] }
0x129b   : > { %v2891_v59 = vpop.permute.xlu0 %2890 }
0x129f   : > { %v2899_v48 = vpop.permute.xlu0 %2898 }
0x12a2   : > { %v4228_v60 = vpop.permute.xlu1 %4227 }
0x12a3   : > { %v4230_v25 = vunpack.i.h.bf16 %v4228_v60  ;;  %v4229_v54 = vunpack.i.l.bf16 %v4228_v60 }
0x12a5   : > { %v2897_v1 = vsel %vm381_vm13, %v4229_v54, %v4230_v25  ;;  %v2896_v9 = vsel %vm381_vm13, %v2891_v59, %v4229_v54  ;;  %vm5433_vm13 = vcmask 203776   ;;  %v3106_v59 = vld [vmem:[%s5386_s3 + $0xb8] sm:$0xff] }
0x12a6   : > { %v4236_v18 = vpack.i.bf16 %v4230_v25, %v2897_v1  ;;  %v4233_v5 = vpop.permute.xlu1 %4232  ;;  %v3834_v60 = vpack.c.bf16 %v3106_v59, %v3105_v33  ;;  %v3089_v25 = vld [vmem:[%s5386_s3 + $0x30] sm:$0xff]  ;;  %v3090_v54 = vld [vmem:[%s5386_s3 + $0x38] sm:$0xff]  ;;  %v3107_v1 = vld [vmem:[%s5386_s3 + $0xc0] sm:$0xff] }
0x12a7   : > { %v4235_v2 = vunpack.i.h.bf16 %v4233_v5  ;;  %v4234_v8 = vunpack.i.l.bf16 %v4233_v5  ;;  %v3836_v5 = vpack.c.bf16 %v3090_v54, %v3089_v25 }
0x12a8   : > { %4237 = vrot.lane.b32.xlu1 %v4236_v18, %s4324_s29  ;;  %v3108_v18 = vld [vmem:[%s5386_s3 + $0xc8] sm:$0xff] }
0x12a9   : > { %v2905_v10 = vsel %vm396_vm14, %v4234_v8, %v4235_v2  ;;  %v2904_v28 = vsel %vm396_vm14, %v2899_v48, %v4234_v8  ;;  %v3091_v8 = vld [vmem:[%s5386_s3 + $0x40] sm:$0xff]  ;;  %v3092_v48 = vld [vmem:[%s5386_s3 + $0x48] sm:$0xff] }
0x12aa   : > { %v4241_v12 = vpack.i.bf16 %v2905_v10, %v2896_v9  ;;  %v4246_v29 = vpack.i.bf16 %v2904_v28, %v4235_v2  ;;  %v3109_v9 = vld [vmem:[%s5386_s3 + $0xd0] sm:$0xff] }
0x12ac   : > { %4242 = vrot.lane.b32.xlu0 %v4241_v12, %s4324_s29  ;;  %4247 = vrot.lane.b32.xlu1 %v4246_v29, %s4324_s29  ;;  %v3093_v29 = vld [vmem:[%s5386_s3 + $0x50] sm:$0xff]  ;;  %s237_s29 = scalar_lea.vmem [#allocation6], %s3352_s14 }
0x12ad   : > { %s3282_s9 = sshll.u32 %s237_s29, 4  ;;  %s5341_s9 = int_to_ptr.vmem [resolvable:$true] %s3282_s9 }
0x12ae   : > { %s4251_s10 = scalar_lea.vmem %s5341_s9, 128  ;;  %p4258_p2 = scmp.lt.s32.totalorder %s5341_s9, %s4256_s11 }
0x12af   : > { %p4252_p13 = scmp.ne.s32.totalorder %s5341_s9, %s4251_s10  ;;  %p4259_p3 = scmp.lt.s32.totalorder %s4257_s12, %s4251_s10 }
0x12b1   : > { %p4253_p0 = pnand %p4252_p13, %p4401_p6  ;;  %p4260_p4 = por %p4259_p3, %p4258_p2 }
0x12b3   : > { %p4254_p1 = pneg %p4253_p0 }
0x12b5   : > { %p4261_p5 = pnand %p4260_p4, %p4254_p1 }
0x131a   : > { %v4238_v14 = vpop.permute.xlu1 %4237 }
0x131b   : > { %v4240_v15 = vunpack.i.h.bf16 %v4238_v14  ;;  %v4239_v16 = vunpack.i.l.bf16 %v4238_v14  ;;  %v3094_v14 = vld [vmem:[%s5386_s3 + $0x58] sm:$0xff] }
0x131d   : > { %v3816_v17 = vpack.c.bf16 %v4240_v15, %v4235_v2  ;;  %v2921_v19 = vsel %vm396_vm14, %v4239_v16, %v4240_v15  ;;  %v3838_v2 = vpack.c.bf16 %v3108_v18, %v3107_v1  ;;  %v3111_v15 = vld [vmem:[%s5386_s3 + $0xe0] sm:$0xff] }
0x131e   : > { %v4248_v20 = vpop.permute.xlu1 %4247  ;;  %v4243_v21 = vpop.permute.xlu0 %4242  ;;  %v3805_v55 = vpack.c.bf16 %v2921_v19, %v2905_v10  ;;  %v3110_v10 = vld [vmem:[%s5386_s3 + $0xd8] sm:$0xff] }
0x131f   : > { %v4250_v61 = vunpack.i.h.bf16 %v4248_v20  ;;  %v4249_v22 = vunpack.i.l.bf16 %v4248_v20  ;;  %v4245_v23 = vunpack.i.h.bf16 %v4243_v21  ;;  %v4244_v4 = vunpack.i.l.bf16 %v4243_v21  ;;  %3817 = vmatpush3.bf16.msra.mxu1 %v3816_v17  ;;  %v3095_v20 = vld [vmem:[%s5386_s3 + $0x60] sm:$0xff]  ;;  %v3096_v21 = vld [vmem:[%s5386_s3 + $0x68] sm:$0xff] }
0x1320   : > { %3806 = vmatprep.subr.bf16.mxu0 %v3805_v55  ;;  %3818 = vmatprep.subr.bf16.mxu1 %v4332_v39  ;;  %v3842_v12 = vpack.c.bf16 %v3110_v10, %v3109_v9  ;;  %v3844_v17 = vpack.c.bf16 %v3094_v14, %v3093_v29  ;;  %v3848_v55 = vpack.c.bf16 %v3096_v21, %v3095_v20 }
0x1321   : > { %v3819_v27 = vpack.c.bf16 %v4999_v11, %v4249_v22  ;;  %v2923_v30 = vsel %vm396_vm14, %v4245_v23, %v4249_v22  ;;  %v2920_v32 = vsel %vm396_vm14, %v4244_v4, %v4239_v16  ;;  %v2922_v44 = vsel %vm396_vm14, %v4250_v61, %v4245_v23  ;;  %vm5434_vm14 = vmmov %vm5433_vm13  ;;  %v3112_v16 = vld [vmem:[%s5386_s3 + $0xe8] sm:$0xff]  ;;  %v3113_v61 = vld [vmem:[%s5386_s3 + $0xf0] sm:$0xff] }
0x1322   : > { %v3809_v34 = vpack.c.bf16 %v5008_v3, %v2923_v30  ;;  %v3807_v36 = vpack.c.bf16 %v2920_v32, %v2904_v28  ;;  %v3855_v11 = vpack.c.bf16 %v3116_v26, %v3115_v24  ;;  %v3117_v3 = vld [vmem:[%s5386_s3 + $0x110] sm:$0xff]  ;;  %v3812_v50 = vpack.c.bf16 %v5003_v13, %v2922_v44  ;;  %v3114_v22 = vld [vmem:[%s5386_s3 + $0xf8] sm:$0xff]  ;;  %v3119_v26 = vld [vmem:[%s5386_s3 + $0x120] sm:$0xff] }
0x1323   : > { %3821 = vmatpush3.bf16.msk.msra.mxu1 %vm4576_vm11, %v3819_v27  ;;  %v3858_v6 = vpack.c.bf16 %v3118_v46, %v3117_v3  ;;  %v3826_v13 = vpack.c.bf16 %v3102_v35, %v3101_v51  ;;  %v3840_v28 = vpack.c.bf16 %v3092_v48, %v3091_v8  ;;  %v3846_v19 = vpack.c.bf16 %v3112_v16, %v3111_v15  ;;  %v3097_v4 = vld [vmem:[%s5386_s3 + $0x70] sm:$0xff]  ;;  %v3098_v24 = vld [vmem:[%s5386_s3 + $0x78] sm:$0xff]  ;;  %v3120_v30 = vld [vmem:[%s5386_s3 + $0x128] sm:$0xff] }
0x1324   : > { %3808 = vmatpush1.bf16.msra.mxu0 %v3807_v36  ;;  %3854 = vmatprep.subr.bf16.mxu1 %v4332_v39  ;;  %v3850_v23 = vpack.c.bf16 %v3114_v22, %v3113_v61  ;;  %v3852_v27 = vpack.c.bf16 %v3098_v24, %v3097_v4  ;;  %v3861_v32 = vpack.c.bf16 %v3120_v30, %v3119_v26 }
0x1325   : > { %3811 = vmatprep.subr.msk.bf16.mxu0 %vm4576_vm11, %v3809_v34  ;;  %v3121_v34 = vld [vmem:[%s5386_s3 + $0x130] sm:$0xff] }
0x1326   : > { %3645 = vmatmul.mubr.msk.f32.vlgmr.msra.gmra.mrb[22].mxu1 %vm5433_vm13, %v3412_v62 }
0x1327   : > { %3856 = vmatpush3.bf16.msra.mxu1 %v3855_v11  ;;  %3661 = vmatprep.mubr.msk.f32.mxu1 %vm4333_vm6, %v4328_v31 }
0x1328   : > { %3814 = vmatpush1.bf16.msk.msra.mxu0 %vm4576_vm11, %v3812_v50  ;;  %3857 = vmatprep.subr.bf16.mxu1 %v4332_v39  ;;  %vm3266_vm11 = vcmask 64512  }
0x1329   : > { %3823 = vmatprep.subr.bf16.mxu0 %v3822_v47 }
0x132b   : > { %3415 = vmatmul.mubr.msk.f32.vlgmr.msra.gmra.mrb[18].mxu0 %vm5434_vm14, %v3412_v62  ;;  %3859 = vmatpush3.bf16.msra.mxu1 %v3858_v6 }
0x132c   : > { %3825 = vmatpush3.bf16.msra.mxu0 %v3824_v38  ;;  %3860 = vmatprep.subr.bf16.mxu1 %v4332_v39  ;;  %v3832_v39 = vpack.c.bf16 %v3088_v58, %v3087_v53 }
0x132d   : > { %3827 = vmatprep.subr.bf16.mxu0 %v3826_v13 }
0x132f   : > { %3862 = vmatpush3.bf16.msra.mxu1 %v3861_v32 }
0x1330   : > { %3829 = vmatpush3.bf16.msra.mxu0 %v3828_v41  ;;  %3659 = vmatprep.subr.mxu1 %v4328_v31 }
0x1331   : > { %3831 = vmatprep.subr.bf16.mxu0 %v3830_v52 }
0x1333   : > { %3660 = vmatpush3.msra.mxu1 %v3121_v34 }
0x1334   : > { %3833 = vmatpush3.bf16.msra.mxu0 %v3832_v39 }
0x1335   : > { %3835 = vmatprep.subr.bf16.mxu0 %v3834_v60 }
0x1338   : > { %3837 = vmatpush3.bf16.msra.mxu0 %v3836_v5 }
0x1339   : > { %3839 = vmatprep.subr.bf16.mxu0 %v3838_v2 }
0x133c   : > { %3841 = vmatpush3.bf16.msra.mxu0 %v3840_v28 }
0x133d   : > { %3843 = vmatprep.subr.bf16.mxu0 %v3842_v12 }
0x1340   : > { %3845 = vmatpush3.bf16.msra.mxu0 %v3844_v17 }
0x1341   : > { %3847 = vmatprep.subr.bf16.mxu0 %v3846_v19 }
0x1344   : > { %3849 = vmatpush3.bf16.msra.mxu0 %v3848_v55 }
0x1345   : > { %3851 = vmatprep.subr.bf16.mxu0 %v3850_v23 }
0x1348   : > { %3853 = vmatpush3.bf16.msra.mxu0 %v3852_v27 }
0x13f9   : > { %v3073_v36 = vpop.f32.mrb[22].mxu1 }
0x13fa   : > { %v3079_v37 = vmax.f32 %v3073_v36, 0.0  ;;  %v3646_v42 = vpop.f32.mrb[23].mxu1 }
0x13fc   : > { %v3082_v44 = vsel %vm688_vm3, %v3079_v37, 0.0 }
0x13fd   : > { %3662 = vmatmul.mubr.msk.f32.vlgmr.msra.gmra.mrb[24].mxu1 %vm3122_vm4, %v3082_v44 }
0x13fe   : > { %v3002_v11 = vpop.f32.mrb[18].mxu0 }
0x13ff   : > { %v3004_v3 = vpop.f32.mrb[19].mxu0  ;;  %v3077_v62 = vmax.f32 %v3002_v11, 0.0 }
0x1400   : > { %v3078_v46 = vmax.f32 %v3004_v3, 0.0 }
0x1402   : > { %3418 = vmatprep.mubr.msk.f32.mxu0 %vm687_vm12, %v3078_v46 }
0x1403   : > { %3419 = vmatmul.mubr.msk.f32.vlgmr.msra.gmra.mrb[20].mxu0 %vm686_vm7, %v3077_v62 }
0x14d0   : > { %v3262_v31 = vpop.f32.mrb[24].mxu1 }
0x14d1   : > { %v3663_v47 = vpop.f32.mrb[25].mxu1 }
0x14d6   : > { %v3513_v45 = vpop.f32.mrb[20].mxu0 }
0x14d7   : > { %v3514_v49 = vpop.f32.mrb[21].mxu0 }
0x14d8   : > { %v3515_v0 = vadd.f32 %v3514_v49, %v3513_v45 }
0x14da   : > { %v3263_v50 = vadd.f32 %v3515_v0, %v3262_v31 }
0x14dc   : > { %3267 = vst.msk [vmem:[%s237_s29] sm:$0xff] %vm3266_vm11, %v3263_v50 }
0x14dd   : > { %4264 = shalt.err (!%p4261_p5)
}
0x14de   : > { %s4265_s8 = scalar_lea.hbm %s5339_s23, 128  ;;  %s4269_s7 = scalar_lea.hbm %s5387_s4, 256 }
0x14df   : > { %p4266_p7 = scmp.ne.s32.totalorder %s5339_s23, %s4265_s8  ;;  %p4270_p12 = scmp.lt.u32.totalorder %s5339_s23, %s5387_s4 }
0x14e0   : > { %p4271_p13 = scmp.lt.u32.totalorder %s4269_s7, %s4265_s8  ;;  %p4273_p1 = scmp.lt.u32.totalorder %s4265_s8, %s5339_s23 }
0x14e1   : > { %p4267_p10 = pnand %p4266_p7, %p4401_p6 }
0x14e2   : > { %p4272_p0 = por %p4271_p13, %p4270_p12 }
0x14e3   : > { %p4268_p11 = pneg %p4267_p10 }
0x14e4   : > { %p4274_p2 = por %p4273_p1, %p4272_p0 }
0x14e6   : > { %p4275_p3 = pnand %p4274_p2, %p4268_p11 }
0x14e8   : > { %4278 = shalt.err (!%p4275_p3)
}
0x14e9   : > { %3865 = dma.vmem_to_hbm [thread:$0]  (%p4401_p6), %s5341_s9, 128, %s5339_s23, %s3269_s27  }
0x14ea PF: > { %s3294_s14 = sand.u32 1, %s4301_s15   ;;  %p3868_p4 = pnand %p3349_p9, %p4405_p8 }
0x14eb   : > { %s3295_s30 = scalar_lea.sflag [#allocation7], %s3294_s14 }
0x14ec   : > { %4296 = dma.done.wait (!%p3868_p4), %s3295_s30, 128  }
0x14ed   : > { %4298 = vsyncadd (!%p3868_p4), %s3295_s30, 4294967168  ;;  %p14_p5 = scmp.ge.s32.totalorder %s4386_s21, 4   ;;  %s5435_s15 = smov %s4305_s16 }
0x14ee   : > { %s5436_s16 = smov %s4309_s17  ;;  %s5437_s17 = smov %s4399_s24 }
0x14ef   : > { %s5438_s18 = smov %s4386_s21  ;;  %16 = sbr.rel (!%p14_p5) target bundleno = 3 (0x3), region = 124 }
0x14f6   :  { %3300 = vsyncpa [#allocation7], 1 }
0x14f7   :  { %3302 = vsyncpa [#allocation7 + $0x1], 1 }

</bundles_post_ra>
